<compile_context>
chip_gen: v6e
topology: v6e:2x2x1
jax: 0.10.0
libtpu: 0.0.40
codegen_flags: <defaults>
</compile_context>

<pallas_src>
import jax
import jax.numpy as jnp
from jax import lax
from jax.experimental import pallas as pl
from jax.experimental.pallas import tpu as pltpu

# ----------------------------- model config ---------------------------------
VOCAB = 128
SEQ = 8
HIDDEN = 32
N_HEADS = 2
HEAD_DIM = HIDDEN // N_HEADS
N_LAYERS = 2
INTERMEDIATE = 64
TYPE_VOCAB = 2
LN_EPS = 1e-12
NUM_CLASSES = 2
CLS_PAD = 128          # lane-dense padded classifier width (sliced back to 2 in JAX)


# ----------------------------- fused kernel ---------------------------------
def _layernorm(x, g, b):
    mean = jnp.mean(x, axis=-1, keepdims=True)
    xc = x - mean
    var = jnp.mean(xc * xc, axis=-1, keepdims=True)
    return (xc * lax.rsqrt(var + LN_EPS)) * g + b


def _fused_bert_kernel(ids_ref, mask_ref,
                       word_emb_ref, pos_emb_ref, type_emb_ref,
                       emb_g_ref, emb_b_ref,
                       wqkv_ref, bqkv_ref, wo_ref, bo_ref,
                       ln1_g_ref, ln1_b_ref,
                       wi_ref, bi_ref, wo2_ref, bo2_ref,
                       ln2_g_ref, ln2_b_ref,
                       cls_w_ref, cls_b_ref,
                       out_ref, attn_ref):
    BS = ids_ref.shape[0]                                             # B*S rows
    B, S = mask_ref.shape
    scale = 1.0 / (HEAD_DIM ** 0.5)

    # --- embeddings fully in-kernel: gathers as one-hot MXU matmuls ---------
    word_oh = (ids_ref[...] ==
               lax.broadcasted_iota(jnp.int32, (BS, VOCAB), 1)).astype(jnp.float32)
    x = jnp.dot(word_oh, word_emb_ref[...], preferred_element_type=jnp.float32)

    pos_id = lax.broadcasted_iota(jnp.int32, (BS, S), 0) % S          # row % S
    pos_oh = (pos_id ==
              lax.broadcasted_iota(jnp.int32, (BS, S), 1)).astype(jnp.float32)
    x = x + jnp.dot(pos_oh, pos_emb_ref[...], preferred_element_type=jnp.float32)
    x = x + type_emb_ref[0:1, :]                                      # token_type_ids == 0

    # Embedding LayerNorm (dropout is identity in eval mode).
    x = _layernorm(x, emb_g_ref[...], emb_b_ref[...])                 # (B*S, H)

    # HF-BERT additive attention bias: 0 where attended, -1e4 where masked.
    bias_all = (1.0 - mask_ref[...].astype(jnp.float32)) * -10000.0   # (B, S)

    for layer in range(N_LAYERS):
        wqkv = wqkv_ref[layer]                                        # (H, 3H)
        wo = wo_ref[layer]                                            # (H, H)

        # --- fused QKV projection: one (B*S, H) @ (H, 3H) matmul ---
        qkv = jnp.dot(x, wqkv, preferred_element_type=jnp.float32) + bqkv_ref[layer]

        # --- masked MHSA, unrolled over (batch, head); output projection is
        #     accumulated per head so scratch stores stay tile-aligned ---
        for b in range(B):
            rows = slice(b * S, (b + 1) * S)
            bias_b = bias_all[b:b + 1, :]                             # (1, S)
            acc = jnp.zeros((S, HIDDEN), jnp.float32)
            for h in range(N_HEADS):
                c0 = h * HEAD_DIM
                q = qkv[rows, c0:c0 + HEAD_DIM]                       # (S, Dh)
                k = qkv[rows, HIDDEN + c0:HIDDEN + c0 + HEAD_DIM]     # (S, Dh)
                v = qkv[rows, 2 * HIDDEN + c0:2 * HIDDEN + c0 + HEAD_DIM]
                # q @ k^T directly via dot_general (no transpose materialized).
                scores = lax.dot_general(q, k, (((1,), (1,)), ((), ())),
                                         preferred_element_type=jnp.float32)
                scores = scores * scale + bias_b                      # (S, S)
                m = jnp.max(scores, axis=-1, keepdims=True)
                p = jnp.exp(scores - m)
                probs = p / jnp.sum(p, axis=-1, keepdims=True)
                ctx_h = jnp.dot(probs, v, preferred_element_type=jnp.float32)
                # accumulate this head's contribution to the output projection
                acc = acc + jnp.dot(ctx_h, wo[c0:c0 + HEAD_DIM, :],
                                    preferred_element_type=jnp.float32)
            attn_ref[rows, :] = acc                                   # aligned store

        # --- output-proj bias + residual + LayerNorm (fused epilogue) ---
        attn_out = attn_ref[...] + bo_ref[layer]
        x = _layernorm(x + attn_out, ln1_g_ref[layer], ln1_b_ref[layer])

        # --- FFN: GELU matmul + projection + residual + LayerNorm ---
        h1 = jnp.dot(x, wi_ref[layer], preferred_element_type=jnp.float32) + bi_ref[layer]
        # TODO(synk): HF BERT's default activation is exact erf-GELU; the tanh
        # approximation is used here for robust Mosaic lowering (~1e-3 drift).
        h1 = jax.nn.gelu(h1, approximate=True)
        ffn_out = jnp.dot(h1, wo2_ref[layer], preferred_element_type=jnp.float32) + bo2_ref[layer]
        x = _layernorm(x + ffn_out, ln2_g_ref[layer], ln2_b_ref[layer])

    # --- classifier on all positions into a lane-dense (B*S, 128) slab; the
    #     [CLS] rows and the 2 real classes are sliced out in JAX (free) ---
    logits_all = jnp.dot(x, cls_w_ref[...], preferred_element_type=jnp.float32) + cls_b_ref[...]
    out_ref[...] = logits_all


# ------------------------------ parameters ----------------------------------
def init_params(key):
    keys = iter(jax.random.split(key, 64))

    def nrm(shape, scale=0.02):
        return scale * jax.random.normal(next(keys), shape, dtype=jnp.float32)

    params = {
        "word_emb": nrm((VOCAB, HIDDEN)),
        "pos_emb": nrm((SEQ, HIDDEN)),
        "type_emb": nrm((TYPE_VOCAB, HIDDEN)),
        "emb_ln_g": jnp.ones((1, HIDDEN), jnp.float32),
        "emb_ln_b": jnp.zeros((1, HIDDEN), jnp.float32),
    }

    wqkv, bqkv, wo, bo = [], [], [], []
    ln1g, ln1b, wi, bi, wo2, bo2, ln2g, ln2b = [], [], [], [], [], [], [], []
    for _ in range(N_LAYERS):
        wq_, wk_, wv_ = nrm((HIDDEN, HIDDEN)), nrm((HIDDEN, HIDDEN)), nrm((HIDDEN, HIDDEN))
        wqkv.append(jnp.concatenate([wq_, wk_, wv_], axis=1))          # (H, 3H)
        bqkv.append(jnp.zeros((1, 3 * HIDDEN), jnp.float32))
        wo.append(nrm((HIDDEN, HIDDEN)))
        bo.append(jnp.zeros((1, HIDDEN), jnp.float32))
        ln1g.append(jnp.ones((1, HIDDEN), jnp.float32))
        ln1b.append(jnp.zeros((1, HIDDEN), jnp.float32))
        wi.append(nrm((HIDDEN, INTERMEDIATE)))
        bi.append(jnp.zeros((1, INTERMEDIATE), jnp.float32))
        wo2.append(nrm((INTERMEDIATE, HIDDEN)))
        bo2.append(jnp.zeros((1, HIDDEN), jnp.float32))
        ln2g.append(jnp.ones((1, HIDDEN), jnp.float32))
        ln2b.append(jnp.zeros((1, HIDDEN), jnp.float32))

    params.update({
        "wqkv": jnp.stack(wqkv), "bqkv": jnp.stack(bqkv),
        "wo": jnp.stack(wo), "bo": jnp.stack(bo),
        "ln1_g": jnp.stack(ln1g), "ln1_b": jnp.stack(ln1b),
        "wi": jnp.stack(wi), "bi": jnp.stack(bi),
        "wo2": jnp.stack(wo2), "bo2": jnp.stack(bo2),
        "ln2_g": jnp.stack(ln2g), "ln2_b": jnp.stack(ln2b),
    })

    cls_w = nrm((HIDDEN, NUM_CLASSES))
    params["cls_w_pad"] = jnp.concatenate(
        [cls_w, jnp.zeros((HIDDEN, CLS_PAD - NUM_CLASSES), jnp.float32)], axis=1)
    params["cls_b_pad"] = jnp.zeros((1, CLS_PAD), jnp.float32)
    return params


# ------------------------------ forward pass ---------------------------------
@jax.jit
def bert_classifier_forward(params, input_ids, attention_mask):
    B, S = input_ids.shape

    # Only integer glue stays in XLA: a reshape of the token ids.  All embedding
    # lookups / mask-bias math / encoder / classifier run in ONE Pallas kernel.
    ids = input_ids.reshape(B * S, 1).astype(jnp.int32)
    mask = attention_mask.astype(jnp.int32)

    out = pl.pallas_call(
        _fused_bert_kernel,
        out_shape=jax.ShapeDtypeStruct((B * S, CLS_PAD), jnp.float32),
        scratch_shapes=[pltpu.VMEM((B * S, HIDDEN), jnp.float32)],
    )(ids, mask,
      params["word_emb"], params["pos_emb"], params["type_emb"],
      params["emb_ln_g"], params["emb_ln_b"],
      params["wqkv"], params["bqkv"], params["wo"], params["bo"],
      params["ln1_g"], params["ln1_b"],
      params["wi"], params["bi"], params["wo2"], params["bo2"],
      params["ln2_g"], params["ln2_b"],
      params["cls_w_pad"], params["cls_b_pad"])

    # [CLS] is position 0 of each sequence; keep the 2 real classes.
    logits = out[0::S, :NUM_CLASSES]
    return logits


# ---------------------------------- main -------------------------------------
if __name__ == "__main__":
    key = jax.random.PRNGKey(0)
    pkey, ikey = jax.random.split(key)
    params = init_params(pkey)

    B = 2
    input_ids = jax.random.randint(ikey, (B, SEQ), 0, VOCAB, dtype=jnp.int32)
    # batch 0 fully attended, batch 1 has the last 3 positions padded out.
    attention_mask = jnp.array(
        [[1] * SEQ, [1] * (SEQ - 3) + [0] * 3], dtype=jnp.int32)

    logits = bert_classifier_forward(params, input_ids, attention_mask)
    logits = jax.block_until_ready(logits)
    assert logits.shape == (B, NUM_CLASSES)
    assert bool(jnp.all(jnp.isfinite(logits)))
    print("KERNEL_OK")
</pallas_src>

<mosaic_0001>
module attributes {stable_mosaic.version = 11 : i64} {
  func.func @_fused_bert_kernel(%arg0: memref<16x1xi32, #tpu.memory_space<vmem>>, %arg1: memref<2x8xi32, #tpu.memory_space<vmem>>, %arg2: memref<128x32xf32, #tpu.memory_space<vmem>>, %arg3: memref<8x32xf32, #tpu.memory_space<vmem>>, %arg4: memref<2x32xf32, #tpu.memory_space<vmem>>, %arg5: memref<1x32xf32, #tpu.memory_space<vmem>>, %arg6: memref<1x32xf32, #tpu.memory_space<vmem>>, %arg7: memref<2x32x96xf32, #tpu.memory_space<vmem>>, %arg8: memref<2x1x96xf32, #tpu.memory_space<vmem>>, %arg9: memref<2x32x32xf32, #tpu.memory_space<vmem>>, %arg10: memref<2x1x32xf32, #tpu.memory_space<vmem>>, %arg11: memref<2x1x32xf32, #tpu.memory_space<vmem>>, %arg12: memref<2x1x32xf32, #tpu.memory_space<vmem>>, %arg13: memref<2x32x64xf32, #tpu.memory_space<vmem>>, %arg14: memref<2x1x64xf32, #tpu.memory_space<vmem>>, %arg15: memref<2x64x32xf32, #tpu.memory_space<vmem>>, %arg16: memref<2x1x32xf32, #tpu.memory_space<vmem>>, %arg17: memref<2x1x32xf32, #tpu.memory_space<vmem>>, %arg18: memref<2x1x32xf32, #tpu.memory_space<vmem>>, %arg19: memref<32x128xf32, #tpu.memory_space<vmem>>, %arg20: memref<1x128xf32, #tpu.memory_space<vmem>>, %arg21: memref<16x128xf32, #tpu.memory_space<vmem>>, %arg22: memref<16x32xf32, #tpu.memory_space<vmem>>) attributes {dimension_semantics = [], scalar_prefetch = 0 : i64, scratch_operands = 1 : i64, tpu.core_type = #tpu.core_type<tc>} {
    %c0 = arith.constant 0 : index
    %c0_0 = arith.constant 0 : index
    %0 = vector.load %arg0[%c0, %c0_0] : memref<16x1xi32, #tpu.memory_space<vmem>>, vector<16x1xi32>
    %1 = tpu.iota {dimensions = array<i32: 1>} : vector<16x128xi32>
    %2 = vector.broadcast %0 : vector<16x1xi32> to vector<16x128xi32>
    %3 = arith.cmpi eq, %2, %1 : vector<16x128xi32>
    %4 = arith.extui %3 : vector<16x128xi1> to vector<16x128xi32>
    %5 = arith.sitofp %4 : vector<16x128xi32> to vector<16x128xf32>
    %c0_1 = arith.constant 0 : index
    %c0_2 = arith.constant 0 : index
    %6 = vector.load %arg2[%c0_1, %c0_2] : memref<128x32xf32, #tpu.memory_space<vmem>>, vector<128x32xf32>
    %cst = arith.constant dense<0.000000e+00> : vector<16x32xf32>
    %7 = tpu.matmul %5, %6, %cst {dimension_numbers = #tpu.dot_dimension_numbers<[1], [0], [0], [1], [0, 0, 1, 1], [], []>} : vector<16x128xf32>, vector<128x32xf32>, vector<16x32xf32> -> vector<16x32xf32>
    %8 = tpu.iota {dimensions = array<i32: 0>} : vector<16x8xi32>
    %c8_i32 = arith.constant 8 : i32
    %c0_i32 = arith.constant 0 : i32
    %9 = arith.cmpi eq, %c8_i32, %c0_i32 : i32
    %c1_i32 = arith.constant 1 : i32
    %10 = arith.select %9, %c1_i32, %c8_i32 : i32
    %11 = vector.broadcast %10 : i32 to vector<16x8xi32>
    %12 = arith.remsi %8, %11 : vector<16x8xi32>
    %c0_i32_3 = arith.constant 0 : i32
    %13 = vector.broadcast %c0_i32_3 : i32 to vector<16x8xi32>
    %14 = arith.cmpi ne, %12, %13 : vector<16x8xi32>
    %c0_i32_4 = arith.constant 0 : i32
    %15 = vector.broadcast %c0_i32_4 : i32 to vector<16x8xi32>
    %16 = arith.cmpi slt, %12, %15 : vector<16x8xi32>
    %c0_i32_5 = arith.constant 0 : i32
    %17 = arith.cmpi slt, %10, %c0_i32_5 : i32
    %18 = vector.broadcast %17 : i1 to vector<16x8xi1>
    %19 = vector.broadcast %18 : vector<16x8xi1> to vector<16x8xi1>
    %20 = arith.xori %16, %19 : vector<16x8xi1>
    %21 = arith.andi %20, %14 : vector<16x8xi1>
    %22 = vector.broadcast %10 : i32 to vector<16x8xi32>
    %23 = arith.addi %12, %22 : vector<16x8xi32>
    %24 = arith.select %21, %23, %12 : vector<16x8xi1>, vector<16x8xi32>
    %25 = tpu.iota {dimensions = array<i32: 1>} : vector<16x8xi32>
    %26 = arith.cmpi eq, %24, %25 : vector<16x8xi32>
    %27 = arith.extui %26 : vector<16x8xi1> to vector<16x8xi32>
    %28 = arith.sitofp %27 : vector<16x8xi32> to vector<16x8xf32>
    %c0_6 = arith.constant 0 : index
    %c0_7 = arith.constant 0 : index
    %29 = vector.load %arg3[%c0_6, %c0_7] : memref<8x32xf32, #tpu.memory_space<vmem>>, vector<8x32xf32>
    %cst_8 = arith.constant dense<0.000000e+00> : vector<16x32xf32>
    %30 = tpu.matmul %28, %29, %cst_8 {dimension_numbers = #tpu.dot_dimension_numbers<[1], [0], [0], [1], [0, 0, 1, 1], [], []>} : vector<16x8xf32>, vector<8x32xf32>, vector<16x32xf32> -> vector<16x32xf32>
    %31 = arith.addf %7, %30 : vector<16x32xf32>
    %c0_9 = arith.constant 0 : index
    %c0_10 = arith.constant 0 : index
    %32 = vector.load %arg4[%c0_9, %c0_10] : memref<2x32xf32, #tpu.memory_space<vmem>>, vector<1x32xf32>
    %33 = vector.broadcast %32 : vector<1x32xf32> to vector<16x32xf32>
    %34 = arith.addf %31, %33 : vector<16x32xf32>
    %c0_11 = arith.constant 0 : index
    %c0_12 = arith.constant 0 : index
    %35 = vector.load %arg5[%c0_11, %c0_12] : memref<1x32xf32, #tpu.memory_space<vmem>>, vector<1x32xf32>
    %c0_13 = arith.constant 0 : index
    %c0_14 = arith.constant 0 : index
    %36 = vector.load %arg6[%c0_13, %c0_14] : memref<1x32xf32, #tpu.memory_space<vmem>>, vector<1x32xf32>
    %cst_15 = arith.constant dense<0.000000e+00> : vector<16xf32>
    %37 = vector.multi_reduction <add>, %34, %cst_15 [1] : vector<16x32xf32> to vector<16xf32>
    %38 = vector.shape_cast %37 : vector<16xf32> to vector<16x1xf32>
    %cst_16 = arith.constant 3.200000e+01 : f32
    %39 = vector.broadcast %cst_16 : f32 to vector<16x1xf32>
    %40 = arith.divf %38, %39 : vector<16x1xf32>
    %41 = vector.broadcast %40 : vector<16x1xf32> to vector<16x32xf32>
    %42 = arith.subf %34, %41 : vector<16x32xf32>
    %43 = arith.mulf %42, %42 : vector<16x32xf32>
    %cst_17 = arith.constant dense<0.000000e+00> : vector<16xf32>
    %44 = vector.multi_reduction <add>, %43, %cst_17 [1] : vector<16x32xf32> to vector<16xf32>
    %45 = vector.shape_cast %44 : vector<16xf32> to vector<16x1xf32>
    %cst_18 = arith.constant 3.200000e+01 : f32
    %46 = vector.broadcast %cst_18 : f32 to vector<16x1xf32>
    %47 = arith.divf %45, %46 : vector<16x1xf32>
    %cst_19 = arith.constant 9.99999996E-13 : f32
    %48 = vector.broadcast %cst_19 : f32 to vector<16x1xf32>
    %49 = arith.addf %47, %48 : vector<16x1xf32>
    %50 = math.rsqrt %49 : vector<16x1xf32>
    %51 = vector.broadcast %50 : vector<16x1xf32> to vector<16x32xf32>
    %52 = arith.mulf %42, %51 : vector<16x32xf32>
    %53 = vector.broadcast %35 : vector<1x32xf32> to vector<16x32xf32>
    %54 = arith.mulf %52, %53 : vector<16x32xf32>
    %55 = vector.broadcast %36 : vector<1x32xf32> to vector<16x32xf32>
    %56 = arith.addf %54, %55 : vector<16x32xf32>
    %c0_20 = arith.constant 0 : index
    %c0_21 = arith.constant 0 : index
    %57 = vector.load %arg1[%c0_20, %c0_21] : memref<2x8xi32, #tpu.memory_space<vmem>>, vector<2x8xi32>
    %58 = arith.sitofp %57 : vector<2x8xi32> to vector<2x8xf32>
    %cst_22 = arith.constant 1.000000e+00 : f32
    %59 = vector.broadcast %cst_22 : f32 to vector<2x8xf32>
    %60 = arith.subf %59, %58 : vector<2x8xf32>
    %cst_23 = arith.constant -1.000000e+04 : f32
    %61 = vector.broadcast %cst_23 : f32 to vector<2x8xf32>
    %62 = arith.mulf %60, %61 : vector<2x8xf32>
    %c0_24 = arith.constant 0 : index
    %c0_25 = arith.constant 0 : index
    %c0_26 = arith.constant 0 : index
    %63 = vector.load %arg7[%c0_24, %c0_25, %c0_26] : memref<2x32x96xf32, #tpu.memory_space<vmem>>, vector<1x32x96xf32>
    %64 = vector.shape_cast %63 : vector<1x32x96xf32> to vector<32x96xf32>
    %c0_27 = arith.constant 0 : index
    %c0_28 = arith.constant 0 : index
    %c0_29 = arith.constant 0 : index
    %65 = vector.load %arg9[%c0_27, %c0_28, %c0_29] : memref<2x32x32xf32, #tpu.memory_space<vmem>>, vector<1x32x32xf32>
    %66 = vector.shape_cast %65 : vector<1x32x32xf32> to vector<32x32xf32>
    %cst_30 = arith.constant dense<0.000000e+00> : vector<16x96xf32>
    %67 = tpu.matmul %56, %64, %cst_30 {dimension_numbers = #tpu.dot_dimension_numbers<[1], [0], [0], [1], [0, 0, 1, 1], [], []>} : vector<16x32xf32>, vector<32x96xf32>, vector<16x96xf32> -> vector<16x96xf32>
    %c0_31 = arith.constant 0 : index
    %c0_32 = arith.constant 0 : index
    %c0_33 = arith.constant 0 : index
    %68 = vector.load %arg8[%c0_31, %c0_32, %c0_33] : memref<2x1x96xf32, #tpu.memory_space<vmem>>, vector<1x1x96xf32>
    %69 = vector.shape_cast %68 : vector<1x1x96xf32> to vector<1x96xf32>
    %70 = vector.broadcast %69 : vector<1x96xf32> to vector<16x96xf32>
    %71 = arith.addf %67, %70 : vector<16x96xf32>
    %72 = vector.extract_strided_slice %62 {offsets = [0, 0], sizes = [1, 8], strides = [1, 1]} : vector<2x8xf32> to vector<1x8xf32>
    %cst_34 = arith.constant 0.000000e+00 : f32
    %73 = vector.broadcast %cst_34 : f32 to vector<8x32xf32>
    %74 = vector.extract_strided_slice %71 {offsets = [0, 0], sizes = [8, 16], strides = [1, 1]} : vector<16x96xf32> to vector<8x16xf32>
    %75 = vector.extract_strided_slice %71 {offsets = [0, 32], sizes = [8, 16], strides = [1, 1]} : vector<16x96xf32> to vector<8x16xf32>
    %76 = vector.extract_strided_slice %71 {offsets = [0, 64], sizes = [8, 16], strides = [1, 1]} : vector<16x96xf32> to vector<8x16xf32>
    %cst_35 = arith.constant dense<0.000000e+00> : vector<8x8xf32>
    %77 = tpu.matmul %74, %75, %cst_35 {dimension_numbers = #tpu.dot_dimension_numbers<[1], [1], [0], [0], [0, 0, 1, 0], [], []>} : vector<8x16xf32>, vector<8x16xf32>, vector<8x8xf32> -> vector<8x8xf32>
    %cst_36 = arith.constant 2.500000e-01 : f32
    %78 = vector.broadcast %cst_36 : f32 to vector<8x8xf32>
    %79 = arith.mulf %77, %78 : vector<8x8xf32>
    %80 = vector.broadcast %72 : vector<1x8xf32> to vector<8x8xf32>
    %81 = arith.addf %79, %80 : vector<8x8xf32>
    %cst_37 = arith.constant dense<0xFF800000> : vector<8xf32>
    %82 = vector.multi_reduction <maximumf>, %81, %cst_37 [1] : vector<8x8xf32> to vector<8xf32>
    %83 = vector.shape_cast %82 : vector<8xf32> to vector<8x1xf32>
    %84 = vector.broadcast %83 : vector<8x1xf32> to vector<8x8xf32>
    %85 = arith.subf %81, %84 : vector<8x8xf32>
    %86 = math.exp %85 : vector<8x8xf32>
    %cst_38 = arith.constant dense<0.000000e+00> : vector<8xf32>
    %87 = vector.multi_reduction <add>, %86, %cst_38 [1] : vector<8x8xf32> to vector<8xf32>
    %88 = vector.shape_cast %87 : vector<8xf32> to vector<8x1xf32>
    %89 = vector.broadcast %88 : vector<8x1xf32> to vector<8x8xf32>
    %90 = arith.divf %86, %89 : vector<8x8xf32>
    %cst_39 = arith.constant dense<0.000000e+00> : vector<8x16xf32>
    %91 = tpu.matmul %90, %76, %cst_39 {dimension_numbers = #tpu.dot_dimension_numbers<[1], [0], [0], [1], [0, 0, 1, 1], [], []>} : vector<8x8xf32>, vector<8x16xf32>, vector<8x16xf32> -> vector<8x16xf32>
    %92 = vector.extract_strided_slice %66 {offsets = [0, 0], sizes = [16, 32], strides = [1, 1]} : vector<32x32xf32> to vector<16x32xf32>
    %cst_40 = arith.constant dense<0.000000e+00> : vector<8x32xf32>
    %93 = tpu.matmul %91, %92, %cst_40 {dimension_numbers = #tpu.dot_dimension_numbers<[1], [0], [0], [1], [0, 0, 1, 1], [], []>} : vector<8x16xf32>, vector<16x32xf32>, vector<8x32xf32> -> vector<8x32xf32>
    %94 = arith.addf %73, %93 : vector<8x32xf32>
    %95 = vector.extract_strided_slice %71 {offsets = [0, 16], sizes = [8, 16], strides = [1, 1]} : vector<16x96xf32> to vector<8x16xf32>
    %96 = vector.extract_strided_slice %71 {offsets = [0, 48], sizes = [8, 16], strides = [1, 1]} : vector<16x96xf32> to vector<8x16xf32>
    %97 = vector.extract_strided_slice %71 {offsets = [0, 80], sizes = [8, 16], strides = [1, 1]} : vector<16x96xf32> to vector<8x16xf32>
    %cst_41 = arith.constant dense<0.000000e+00> : vector<8x8xf32>
    %98 = tpu.matmul %95, %96, %cst_41 {dimension_numbers = #tpu.dot_dimension_numbers<[1], [1], [0], [0], [0, 0, 1, 0], [], []>} : vector<8x16xf32>, vector<8x16xf32>, vector<8x8xf32> -> vector<8x8xf32>
    %cst_42 = arith.constant 2.500000e-01 : f32
    %99 = vector.broadcast %cst_42 : f32 to vector<8x8xf32>
    %100 = arith.mulf %98, %99 : vector<8x8xf32>
    %101 = vector.broadcast %72 : vector<1x8xf32> to vector<8x8xf32>
    %102 = arith.addf %100, %101 : vector<8x8xf32>
    %cst_43 = arith.constant dense<0xFF800000> : vector<8xf32>
    %103 = vector.multi_reduction <maximumf>, %102, %cst_43 [1] : vector<8x8xf32> to vector<8xf32>
    %104 = vector.shape_cast %103 : vector<8xf32> to vector<8x1xf32>
    %105 = vector.broadcast %104 : vector<8x1xf32> to vector<8x8xf32>
    %106 = arith.subf %102, %105 : vector<8x8xf32>
    %107 = math.exp %106 : vector<8x8xf32>
    %cst_44 = arith.constant dense<0.000000e+00> : vector<8xf32>
    %108 = vector.multi_reduction <add>, %107, %cst_44 [1] : vector<8x8xf32> to vector<8xf32>
    %109 = vector.shape_cast %108 : vector<8xf32> to vector<8x1xf32>
    %110 = vector.broadcast %109 : vector<8x1xf32> to vector<8x8xf32>
    %111 = arith.divf %107, %110 : vector<8x8xf32>
    %cst_45 = arith.constant dense<0.000000e+00> : vector<8x16xf32>
    %112 = tpu.matmul %111, %97, %cst_45 {dimension_numbers = #tpu.dot_dimension_numbers<[1], [0], [0], [1], [0, 0, 1, 1], [], []>} : vector<8x8xf32>, vector<8x16xf32>, vector<8x16xf32> -> vector<8x16xf32>
    %113 = vector.extract_strided_slice %66 {offsets = [16, 0], sizes = [16, 32], strides = [1, 1]} : vector<32x32xf32> to vector<16x32xf32>
    %cst_46 = arith.constant dense<0.000000e+00> : vector<8x32xf32>
    %114 = tpu.matmul %112, %113, %cst_46 {dimension_numbers = #tpu.dot_dimension_numbers<[1], [0], [0], [1], [0, 0, 1, 1], [], []>} : vector<8x16xf32>, vector<16x32xf32>, vector<8x32xf32> -> vector<8x32xf32>
    %115 = arith.addf %94, %114 : vector<8x32xf32>
    %c0_47 = arith.constant 0 : index
    %c0_48 = arith.constant 0 : index
    %116 = vector.load %arg22[%c0_47, %c0_48] : memref<16x32xf32, #tpu.memory_space<vmem>>, vector<8x32xf32>
    tpu.vector_store %arg22[%c0_47, %c0_48], %115 {strides = array<i32>} : memref<16x32xf32, #tpu.memory_space<vmem>>, vector<8x32xf32>,
    %117 = vector.extract_strided_slice %62 {offsets = [1, 0], sizes = [1, 8], strides = [1, 1]} : vector<2x8xf32> to vector<1x8xf32>
    %cst_49 = arith.constant 0.000000e+00 : f32
    %118 = vector.broadcast %cst_49 : f32 to vector<8x32xf32>
    %119 = vector.extract_strided_slice %71 {offsets = [8, 0], sizes = [8, 16], strides = [1, 1]} : vector<16x96xf32> to vector<8x16xf32>
    %120 = vector.extract_strided_slice %71 {offsets = [8, 32], sizes = [8, 16], strides = [1, 1]} : vector<16x96xf32> to vector<8x16xf32>
    %121 = vector.extract_strided_slice %71 {offsets = [8, 64], sizes = [8, 16], strides = [1, 1]} : vector<16x96xf32> to vector<8x16xf32>
    %cst_50 = arith.constant dense<0.000000e+00> : vector<8x8xf32>
    %122 = tpu.matmul %119, %120, %cst_50 {dimension_numbers = #tpu.dot_dimension_numbers<[1], [1], [0], [0], [0, 0, 1, 0], [], []>} : vector<8x16xf32>, vector<8x16xf32>, vector<8x8xf32> -> vector<8x8xf32>
    %cst_51 = arith.constant 2.500000e-01 : f32
    %123 = vector.broadcast %cst_51 : f32 to vector<8x8xf32>
    %124 = arith.mulf %122, %123 : vector<8x8xf32>
    %125 = vector.broadcast %117 : vector<1x8xf32> to vector<8x8xf32>
    %126 = arith.addf %124, %125 : vector<8x8xf32>
    %cst_52 = arith.constant dense<0xFF800000> : vector<8xf32>
    %127 = vector.multi_reduction <maximumf>, %126, %cst_52 [1] : vector<8x8xf32> to vector<8xf32>
    %128 = vector.shape_cast %127 : vector<8xf32> to vector<8x1xf32>
    %129 = vector.broadcast %128 : vector<8x1xf32> to vector<8x8xf32>
    %130 = arith.subf %126, %129 : vector<8x8xf32>
    %131 = math.exp %130 : vector<8x8xf32>
    %cst_53 = arith.constant dense<0.000000e+00> : vector<8xf32>
    %132 = vector.multi_reduction <add>, %131, %cst_53 [1] : vector<8x8xf32> to vector<8xf32>
    %133 = vector.shape_cast %132 : vector<8xf32> to vector<8x1xf32>
    %134 = vector.broadcast %133 : vector<8x1xf32> to vector<8x8xf32>
    %135 = arith.divf %131, %134 : vector<8x8xf32>
    %cst_54 = arith.constant dense<0.000000e+00> : vector<8x16xf32>
    %136 = tpu.matmul %135, %121, %cst_54 {dimension_numbers = #tpu.dot_dimension_numbers<[1], [0], [0], [1], [0, 0, 1, 1], [], []>} : vector<8x8xf32>, vector<8x16xf32>, vector<8x16xf32> -> vector<8x16xf32>
    %137 = vector.extract_strided_slice %66 {offsets = [0, 0], sizes = [16, 32], strides = [1, 1]} : vector<32x32xf32> to vector<16x32xf32>
    %cst_55 = arith.constant dense<0.000000e+00> : vector<8x32xf32>
    %138 = tpu.matmul %136, %137, %cst_55 {dimension_numbers = #tpu.dot_dimension_numbers<[1], [0], [0], [1], [0, 0, 1, 1], [], []>} : vector<8x16xf32>, vector<16x32xf32>, vector<8x32xf32> -> vector<8x32xf32>
    %139 = arith.addf %118, %138 : vector<8x32xf32>
    %140 = vector.extract_strided_slice %71 {offsets = [8, 16], sizes = [8, 16], strides = [1, 1]} : vector<16x96xf32> to vector<8x16xf32>
    %141 = vector.extract_strided_slice %71 {offsets = [8, 48], sizes = [8, 16], strides = [1, 1]} : vector<16x96xf32> to vector<8x16xf32>
    %142 = vector.extract_strided_slice %71 {offsets = [8, 80], sizes = [8, 16], strides = [1, 1]} : vector<16x96xf32> to vector<8x16xf32>
    %cst_56 = arith.constant dense<0.000000e+00> : vector<8x8xf32>
    %143 = tpu.matmul %140, %141, %cst_56 {dimension_numbers = #tpu.dot_dimension_numbers<[1], [1], [0], [0], [0, 0, 1, 0], [], []>} : vector<8x16xf32>, vector<8x16xf32>, vector<8x8xf32> -> vector<8x8xf32>
    %cst_57 = arith.constant 2.500000e-01 : f32
    %144 = vector.broadcast %cst_57 : f32 to vector<8x8xf32>
    %145 = arith.mulf %143, %144 : vector<8x8xf32>
    %146 = vector.broadcast %117 : vector<1x8xf32> to vector<8x8xf32>
    %147 = arith.addf %145, %146 : vector<8x8xf32>
    %cst_58 = arith.constant dense<0xFF800000> : vector<8xf32>
    %148 = vector.multi_reduction <maximumf>, %147, %cst_58 [1] : vector<8x8xf32> to vector<8xf32>
    %149 = vector.shape_cast %148 : vector<8xf32> to vector<8x1xf32>
    %150 = vector.broadcast %149 : vector<8x1xf32> to vector<8x8xf32>
    %151 = arith.subf %147, %150 : vector<8x8xf32>
    %152 = math.exp %151 : vector<8x8xf32>
    %cst_59 = arith.constant dense<0.000000e+00> : vector<8xf32>
    %153 = vector.multi_reduction <add>, %152, %cst_59 [1] : vector<8x8xf32> to vector<8xf32>
    %154 = vector.shape_cast %153 : vector<8xf32> to vector<8x1xf32>
    %155 = vector.broadcast %154 : vector<8x1xf32> to vector<8x8xf32>
    %156 = arith.divf %152, %155 : vector<8x8xf32>
    %cst_60 = arith.constant dense<0.000000e+00> : vector<8x16xf32>
    %157 = tpu.matmul %156, %142, %cst_60 {dimension_numbers = #tpu.dot_dimension_numbers<[1], [0], [0], [1], [0, 0, 1, 1], [], []>} : vector<8x8xf32>, vector<8x16xf32>, vector<8x16xf32> -> vector<8x16xf32>
    %158 = vector.extract_strided_slice %66 {offsets = [16, 0], sizes = [16, 32], strides = [1, 1]} : vector<32x32xf32> to vector<16x32xf32>
    %cst_61 = arith.constant dense<0.000000e+00> : vector<8x32xf32>
    %159 = tpu.matmul %157, %158, %cst_61 {dimension_numbers = #tpu.dot_dimension_numbers<[1], [0], [0], [1], [0, 0, 1, 1], [], []>} : vector<8x16xf32>, vector<16x32xf32>, vector<8x32xf32> -> vector<8x32xf32>
    %160 = arith.addf %139, %159 : vector<8x32xf32>
    %c8 = arith.constant 8 : index
    %c0_62 = arith.constant 0 : index
    %161 = vector.load %arg22[%c8, %c0_62] : memref<16x32xf32, #tpu.memory_space<vmem>>, vector<8x32xf32>
    tpu.vector_store %arg22[%c8, %c0_62], %160 {strides = array<i32>} : memref<16x32xf32, #tpu.memory_space<vmem>>, vector<8x32xf32>,
    %c0_63 = arith.constant 0 : index
    %c0_64 = arith.constant 0 : index
    %162 = vector.load %arg22[%c0_63, %c0_64] : memref<16x32xf32, #tpu.memory_space<vmem>>, vector<16x32xf32>
    %c0_65 = arith.constant 0 : index
    %c0_66 = arith.constant 0 : index
    %c0_67 = arith.constant 0 : index
    %163 = vector.load %arg10[%c0_65, %c0_66, %c0_67] : memref<2x1x32xf32, #tpu.memory_space<vmem>>, vector<1x1x32xf32>
    %164 = vector.shape_cast %163 : vector<1x1x32xf32> to vector<1x32xf32>
    %165 = vector.broadcast %164 : vector<1x32xf32> to vector<16x32xf32>
    %166 = arith.addf %162, %165 : vector<16x32xf32>
    %167 = arith.addf %56, %166 : vector<16x32xf32>
    %c0_68 = arith.constant 0 : index
    %c0_69 = arith.constant 0 : index
    %c0_70 = arith.constant 0 : index
    %168 = vector.load %arg11[%c0_68, %c0_69, %c0_70] : memref<2x1x32xf32, #tpu.memory_space<vmem>>, vector<1x1x32xf32>
    %169 = vector.shape_cast %168 : vector<1x1x32xf32> to vector<1x32xf32>
    %c0_71 = arith.constant 0 : index
    %c0_72 = arith.constant 0 : index
    %c0_73 = arith.constant 0 : index
    %170 = vector.load %arg12[%c0_71, %c0_72, %c0_73] : memref<2x1x32xf32, #tpu.memory_space<vmem>>, vector<1x1x32xf32>
    %171 = vector.shape_cast %170 : vector<1x1x32xf32> to vector<1x32xf32>
    %cst_74 = arith.constant dense<0.000000e+00> : vector<16xf32>
    %172 = vector.multi_reduction <add>, %167, %cst_74 [1] : vector<16x32xf32> to vector<16xf32>
    %173 = vector.shape_cast %172 : vector<16xf32> to vector<16x1xf32>
    %cst_75 = arith.constant 3.200000e+01 : f32
    %174 = vector.broadcast %cst_75 : f32 to vector<16x1xf32>
    %175 = arith.divf %173, %174 : vector<16x1xf32>
    %176 = vector.broadcast %175 : vector<16x1xf32> to vector<16x32xf32>
    %177 = arith.subf %167, %176 : vector<16x32xf32>
    %178 = arith.mulf %177, %177 : vector<16x32xf32>
    %cst_76 = arith.constant dense<0.000000e+00> : vector<16xf32>
    %179 = vector.multi_reduction <add>, %178, %cst_76 [1] : vector<16x32xf32> to vector<16xf32>
    %180 = vector.shape_cast %179 : vector<16xf32> to vector<16x1xf32>
    %cst_77 = arith.constant 3.200000e+01 : f32
    %181 = vector.broadcast %cst_77 : f32 to vector<16x1xf32>
    %182 = arith.divf %180, %181 : vector<16x1xf32>
    %cst_78 = arith.constant 9.99999996E-13 : f32
    %183 = vector.broadcast %cst_78 : f32 to vector<16x1xf32>
    %184 = arith.addf %182, %183 : vector<16x1xf32>
    %185 = math.rsqrt %184 : vector<16x1xf32>
    %186 = vector.broadcast %185 : vector<16x1xf32> to vector<16x32xf32>
    %187 = arith.mulf %177, %186 : vector<16x32xf32>
    %188 = vector.broadcast %169 : vector<1x32xf32> to vector<16x32xf32>
    %189 = arith.mulf %187, %188 : vector<16x32xf32>
    %190 = vector.broadcast %171 : vector<1x32xf32> to vector<16x32xf32>
    %191 = arith.addf %189, %190 : vector<16x32xf32>
    %c0_79 = arith.constant 0 : index
    %c0_80 = arith.constant 0 : index
    %c0_81 = arith.constant 0 : index
    %192 = vector.load %arg13[%c0_79, %c0_80, %c0_81] : memref<2x32x64xf32, #tpu.memory_space<vmem>>, vector<1x32x64xf32>
    %193 = vector.shape_cast %192 : vector<1x32x64xf32> to vector<32x64xf32>
    %cst_82 = arith.constant dense<0.000000e+00> : vector<16x64xf32>
    %194 = tpu.matmul %191, %193, %cst_82 {dimension_numbers = #tpu.dot_dimension_numbers<[1], [0], [0], [1], [0, 0, 1, 1], [], []>} : vector<16x32xf32>, vector<32x64xf32>, vector<16x64xf32> -> vector<16x64xf32>
    %c0_83 = arith.constant 0 : index
    %c0_84 = arith.constant 0 : index
    %c0_85 = arith.constant 0 : index
    %195 = vector.load %arg14[%c0_83, %c0_84, %c0_85] : memref<2x1x64xf32, #tpu.memory_space<vmem>>, vector<1x1x64xf32>
    %196 = vector.shape_cast %195 : vector<1x1x64xf32> to vector<1x64xf32>
    %197 = vector.broadcast %196 : vector<1x64xf32> to vector<16x64xf32>
    %198 = arith.addf %194, %197 : vector<16x64xf32>
    %199 = arith.mulf %198, %198 : vector<16x64xf32>
    %200 = arith.mulf %198, %199 : vector<16x64xf32>
    %cst_86 = arith.constant 4.471500e-02 : f32
    %201 = vector.broadcast %cst_86 : f32 to vector<16x64xf32>
    %202 = arith.mulf %201, %200 : vector<16x64xf32>
    %203 = arith.addf %198, %202 : vector<16x64xf32>
    %cst_87 = arith.constant 0.797884583 : f32
    %204 = vector.broadcast %cst_87 : f32 to vector<16x64xf32>
    %205 = arith.mulf %204, %203 : vector<16x64xf32>
    %206 = math.tanh %205 : vector<16x64xf32>
    %cst_88 = arith.constant 1.000000e+00 : f32
    %207 = vector.broadcast %cst_88 : f32 to vector<16x64xf32>
    %208 = arith.addf %207, %206 : vector<16x64xf32>
    %cst_89 = arith.constant 5.000000e-01 : f32
    %209 = vector.broadcast %cst_89 : f32 to vector<16x64xf32>
    %210 = arith.mulf %209, %208 : vector<16x64xf32>
    %211 = arith.mulf %198, %210 : vector<16x64xf32>
    %c0_90 = arith.constant 0 : index
    %c0_91 = arith.constant 0 : index
    %c0_92 = arith.constant 0 : index
    %212 = vector.load %arg15[%c0_90, %c0_91, %c0_92] : memref<2x64x32xf32, #tpu.memory_space<vmem>>, vector<1x64x32xf32>
    %213 = vector.shape_cast %212 : vector<1x64x32xf32> to vector<64x32xf32>
    %cst_93 = arith.constant dense<0.000000e+00> : vector<16x32xf32>
    %214 = tpu.matmul %211, %213, %cst_93 {dimension_numbers = #tpu.dot_dimension_numbers<[1], [0], [0], [1], [0, 0, 1, 1], [], []>} : vector<16x64xf32>, vector<64x32xf32>, vector<16x32xf32> -> vector<16x32xf32>
    %c0_94 = arith.constant 0 : index
    %c0_95 = arith.constant 0 : index
    %c0_96 = arith.constant 0 : index
    %215 = vector.load %arg16[%c0_94, %c0_95, %c0_96] : memref<2x1x32xf32, #tpu.memory_space<vmem>>, vector<1x1x32xf32>
    %216 = vector.shape_cast %215 : vector<1x1x32xf32> to vector<1x32xf32>
    %217 = vector.broadcast %216 : vector<1x32xf32> to vector<16x32xf32>
    %218 = arith.addf %214, %217 : vector<16x32xf32>
    %219 = arith.addf %191, %218 : vector<16x32xf32>
    %c0_97 = arith.constant 0 : index
    %c0_98 = arith.constant 0 : index
    %c0_99 = arith.constant 0 : index
    %220 = vector.load %arg17[%c0_97, %c0_98, %c0_99] : memref<2x1x32xf32, #tpu.memory_space<vmem>>, vector<1x1x32xf32>
    %221 = vector.shape_cast %220 : vector<1x1x32xf32> to vector<1x32xf32>
    %c0_100 = arith.constant 0 : index
    %c0_101 = arith.constant 0 : index
    %c0_102 = arith.constant 0 : index
    %222 = vector.load %arg18[%c0_100, %c0_101, %c0_102] : memref<2x1x32xf32, #tpu.memory_space<vmem>>, vector<1x1x32xf32>
    %223 = vector.shape_cast %222 : vector<1x1x32xf32> to vector<1x32xf32>
    %cst_103 = arith.constant dense<0.000000e+00> : vector<16xf32>
    %224 = vector.multi_reduction <add>, %219, %cst_103 [1] : vector<16x32xf32> to vector<16xf32>
    %225 = vector.shape_cast %224 : vector<16xf32> to vector<16x1xf32>
    %cst_104 = arith.constant 3.200000e+01 : f32
    %226 = vector.broadcast %cst_104 : f32 to vector<16x1xf32>
    %227 = arith.divf %225, %226 : vector<16x1xf32>
    %228 = vector.broadcast %227 : vector<16x1xf32> to vector<16x32xf32>
    %229 = arith.subf %219, %228 : vector<16x32xf32>
    %230 = arith.mulf %229, %229 : vector<16x32xf32>
    %cst_105 = arith.constant dense<0.000000e+00> : vector<16xf32>
    %231 = vector.multi_reduction <add>, %230, %cst_105 [1] : vector<16x32xf32> to vector<16xf32>
    %232 = vector.shape_cast %231 : vector<16xf32> to vector<16x1xf32>
    %cst_106 = arith.constant 3.200000e+01 : f32
    %233 = vector.broadcast %cst_106 : f32 to vector<16x1xf32>
    %234 = arith.divf %232, %233 : vector<16x1xf32>
    %cst_107 = arith.constant 9.99999996E-13 : f32
    %235 = vector.broadcast %cst_107 : f32 to vector<16x1xf32>
    %236 = arith.addf %234, %235 : vector<16x1xf32>
    %237 = math.rsqrt %236 : vector<16x1xf32>
    %238 = vector.broadcast %237 : vector<16x1xf32> to vector<16x32xf32>
    %239 = arith.mulf %229, %238 : vector<16x32xf32>
    %240 = vector.broadcast %221 : vector<1x32xf32> to vector<16x32xf32>
    %241 = arith.mulf %239, %240 : vector<16x32xf32>
    %242 = vector.broadcast %223 : vector<1x32xf32> to vector<16x32xf32>
    %243 = arith.addf %241, %242 : vector<16x32xf32>
    %c1 = arith.constant 1 : index
    %c0_108 = arith.constant 0 : index
    %c0_109 = arith.constant 0 : index
    %244 = vector.load %arg7[%c1, %c0_108, %c0_109] : memref<2x32x96xf32, #tpu.memory_space<vmem>>, vector<1x32x96xf32>
    %245 = vector.shape_cast %244 : vector<1x32x96xf32> to vector<32x96xf32>
    %c1_110 = arith.constant 1 : index
    %c0_111 = arith.constant 0 : index
    %c0_112 = arith.constant 0 : index
    %246 = vector.load %arg9[%c1_110, %c0_111, %c0_112] : memref<2x32x32xf32, #tpu.memory_space<vmem>>, vector<1x32x32xf32>
    %247 = vector.shape_cast %246 : vector<1x32x32xf32> to vector<32x32xf32>
    %cst_113 = arith.constant dense<0.000000e+00> : vector<16x96xf32>
    %248 = tpu.matmul %243, %245, %cst_113 {dimension_numbers = #tpu.dot_dimension_numbers<[1], [0], [0], [1], [0, 0, 1, 1], [], []>} : vector<16x32xf32>, vector<32x96xf32>, vector<16x96xf32> -> vector<16x96xf32>
    %c1_114 = arith.constant 1 : index
    %c0_115 = arith.constant 0 : index
    %c0_116 = arith.constant 0 : index
    %249 = vector.load %arg8[%c1_114, %c0_115, %c0_116] : memref<2x1x96xf32, #tpu.memory_space<vmem>>, vector<1x1x96xf32>
    %250 = vector.shape_cast %249 : vector<1x1x96xf32> to vector<1x96xf32>
    %251 = vector.broadcast %250 : vector<1x96xf32> to vector<16x96xf32>
    %252 = arith.addf %248, %251 : vector<16x96xf32>
    %253 = vector.extract_strided_slice %62 {offsets = [0, 0], sizes = [1, 8], strides = [1, 1]} : vector<2x8xf32> to vector<1x8xf32>
    %cst_117 = arith.constant 0.000000e+00 : f32
    %254 = vector.broadcast %cst_117 : f32 to vector<8x32xf32>
    %255 = vector.extract_strided_slice %252 {offsets = [0, 0], sizes = [8, 16], strides = [1, 1]} : vector<16x96xf32> to vector<8x16xf32>
    %256 = vector.extract_strided_slice %252 {offsets = [0, 32], sizes = [8, 16], strides = [1, 1]} : vector<16x96xf32> to vector<8x16xf32>
    %257 = vector.extract_strided_slice %252 {offsets = [0, 64], sizes = [8, 16], strides = [1, 1]} : vector<16x96xf32> to vector<8x16xf32>
    %cst_118 = arith.constant dense<0.000000e+00> : vector<8x8xf32>
    %258 = tpu.matmul %255, %256, %cst_118 {dimension_numbers = #tpu.dot_dimension_numbers<[1], [1], [0], [0], [0, 0, 1, 0], [], []>} : vector<8x16xf32>, vector<8x16xf32>, vector<8x8xf32> -> vector<8x8xf32>
    %cst_119 = arith.constant 2.500000e-01 : f32
    %259 = vector.broadcast %cst_119 : f32 to vector<8x8xf32>
    %260 = arith.mulf %258, %259 : vector<8x8xf32>
    %261 = vector.broadcast %253 : vector<1x8xf32> to vector<8x8xf32>
    %262 = arith.addf %260, %261 : vector<8x8xf32>
    %cst_120 = arith.constant dense<0xFF800000> : vector<8xf32>
    %263 = vector.multi_reduction <maximumf>, %262, %cst_120 [1] : vector<8x8xf32> to vector<8xf32>
    %264 = vector.shape_cast %263 : vector<8xf32> to vector<8x1xf32>
    %265 = vector.broadcast %264 : vector<8x1xf32> to vector<8x8xf32>
    %266 = arith.subf %262, %265 : vector<8x8xf32>
    %267 = math.exp %266 : vector<8x8xf32>
    %cst_121 = arith.constant dense<0.000000e+00> : vector<8xf32>
    %268 = vector.multi_reduction <add>, %267, %cst_121 [1] : vector<8x8xf32> to vector<8xf32>
    %269 = vector.shape_cast %268 : vector<8xf32> to vector<8x1xf32>
    %270 = vector.broadcast %269 : vector<8x1xf32> to vector<8x8xf32>
    %271 = arith.divf %267, %270 : vector<8x8xf32>
    %cst_122 = arith.constant dense<0.000000e+00> : vector<8x16xf32>
    %272 = tpu.matmul %271, %257, %cst_122 {dimension_numbers = #tpu.dot_dimension_numbers<[1], [0], [0], [1], [0, 0, 1, 1], [], []>} : vector<8x8xf32>, vector<8x16xf32>, vector<8x16xf32> -> vector<8x16xf32>
    %273 = vector.extract_strided_slice %247 {offsets = [0, 0], sizes = [16, 32], strides = [1, 1]} : vector<32x32xf32> to vector<16x32xf32>
    %cst_123 = arith.constant dense<0.000000e+00> : vector<8x32xf32>
    %274 = tpu.matmul %272, %273, %cst_123 {dimension_numbers = #tpu.dot_dimension_numbers<[1], [0], [0], [1], [0, 0, 1, 1], [], []>} : vector<8x16xf32>, vector<16x32xf32>, vector<8x32xf32> -> vector<8x32xf32>
    %275 = arith.addf %254, %274 : vector<8x32xf32>
    %276 = vector.extract_strided_slice %252 {offsets = [0, 16], sizes = [8, 16], strides = [1, 1]} : vector<16x96xf32> to vector<8x16xf32>
    %277 = vector.extract_strided_slice %252 {offsets = [0, 48], sizes = [8, 16], strides = [1, 1]} : vector<16x96xf32> to vector<8x16xf32>
    %278 = vector.extract_strided_slice %252 {offsets = [0, 80], sizes = [8, 16], strides = [1, 1]} : vector<16x96xf32> to vector<8x16xf32>
    %cst_124 = arith.constant dense<0.000000e+00> : vector<8x8xf32>
    %279 = tpu.matmul %276, %277, %cst_124 {dimension_numbers = #tpu.dot_dimension_numbers<[1], [1], [0], [0], [0, 0, 1, 0], [], []>} : vector<8x16xf32>, vector<8x16xf32>, vector<8x8xf32> -> vector<8x8xf32>
    %cst_125 = arith.constant 2.500000e-01 : f32
    %280 = vector.broadcast %cst_125 : f32 to vector<8x8xf32>
    %281 = arith.mulf %279, %280 : vector<8x8xf32>
    %282 = vector.broadcast %253 : vector<1x8xf32> to vector<8x8xf32>
    %283 = arith.addf %281, %282 : vector<8x8xf32>
    %cst_126 = arith.constant dense<0xFF800000> : vector<8xf32>
    %284 = vector.multi_reduction <maximumf>, %283, %cst_126 [1] : vector<8x8xf32> to vector<8xf32>
    %285 = vector.shape_cast %284 : vector<8xf32> to vector<8x1xf32>
    %286 = vector.broadcast %285 : vector<8x1xf32> to vector<8x8xf32>
    %287 = arith.subf %283, %286 : vector<8x8xf32>
    %288 = math.exp %287 : vector<8x8xf32>
    %cst_127 = arith.constant dense<0.000000e+00> : vector<8xf32>
    %289 = vector.multi_reduction <add>, %288, %cst_127 [1] : vector<8x8xf32> to vector<8xf32>
    %290 = vector.shape_cast %289 : vector<8xf32> to vector<8x1xf32>
    %291 = vector.broadcast %290 : vector<8x1xf32> to vector<8x8xf32>
    %292 = arith.divf %288, %291 : vector<8x8xf32>
    %cst_128 = arith.constant dense<0.000000e+00> : vector<8x16xf32>
    %293 = tpu.matmul %292, %278, %cst_128 {dimension_numbers = #tpu.dot_dimension_numbers<[1], [0], [0], [1], [0, 0, 1, 1], [], []>} : vector<8x8xf32>, vector<8x16xf32>, vector<8x16xf32> -> vector<8x16xf32>
    %294 = vector.extract_strided_slice %247 {offsets = [16, 0], sizes = [16, 32], strides = [1, 1]} : vector<32x32xf32> to vector<16x32xf32>
    %cst_129 = arith.constant dense<0.000000e+00> : vector<8x32xf32>
    %295 = tpu.matmul %293, %294, %cst_129 {dimension_numbers = #tpu.dot_dimension_numbers<[1], [0], [0], [1], [0, 0, 1, 1], [], []>} : vector<8x16xf32>, vector<16x32xf32>, vector<8x32xf32> -> vector<8x32xf32>
    %296 = arith.addf %275, %295 : vector<8x32xf32>
    %c0_130 = arith.constant 0 : index
    %c0_131 = arith.constant 0 : index
    %297 = vector.load %arg22[%c0_130, %c0_131] : memref<16x32xf32, #tpu.memory_space<vmem>>, vector<8x32xf32>
    tpu.vector_store %arg22[%c0_130, %c0_131], %296 {strides = array<i32>} : memref<16x32xf32, #tpu.memory_space<vmem>>, vector<8x32xf32>,
    %298 = vector.extract_strided_slice %62 {offsets = [1, 0], sizes = [1, 8], strides = [1, 1]} : vector<2x8xf32> to vector<1x8xf32>
    %cst_132 = arith.constant 0.000000e+00 : f32
    %299 = vector.broadcast %cst_132 : f32 to vector<8x32xf32>
    %300 = vector.extract_strided_slice %252 {offsets = [8, 0], sizes = [8, 16], strides = [1, 1]} : vector<16x96xf32> to vector<8x16xf32>
    %301 = vector.extract_strided_slice %252 {offsets = [8, 32], sizes = [8, 16], strides = [1, 1]} : vector<16x96xf32> to vector<8x16xf32>
    %302 = vector.extract_strided_slice %252 {offsets = [8, 64], sizes = [8, 16], strides = [1, 1]} : vector<16x96xf32> to vector<8x16xf32>
    %cst_133 = arith.constant dense<0.000000e+00> : vector<8x8xf32>
    %303 = tpu.matmul %300, %301, %cst_133 {dimension_numbers = #tpu.dot_dimension_numbers<[1], [1], [0], [0], [0, 0, 1, 0], [], []>} : vector<8x16xf32>, vector<8x16xf32>, vector<8x8xf32> -> vector<8x8xf32>
    %cst_134 = arith.constant 2.500000e-01 : f32
    %304 = vector.broadcast %cst_134 : f32 to vector<8x8xf32>
    %305 = arith.mulf %303, %304 : vector<8x8xf32>
    %306 = vector.broadcast %298 : vector<1x8xf32> to vector<8x8xf32>
    %307 = arith.addf %305, %306 : vector<8x8xf32>
    %cst_135 = arith.constant dense<0xFF800000> : vector<8xf32>
    %308 = vector.multi_reduction <maximumf>, %307, %cst_135 [1] : vector<8x8xf32> to vector<8xf32>
    %309 = vector.shape_cast %308 : vector<8xf32> to vector<8x1xf32>
    %310 = vector.broadcast %309 : vector<8x1xf32> to vector<8x8xf32>
    %311 = arith.subf %307, %310 : vector<8x8xf32>
    %312 = math.exp %311 : vector<8x8xf32>
    %cst_136 = arith.constant dense<0.000000e+00> : vector<8xf32>
    %313 = vector.multi_reduction <add>, %312, %cst_136 [1] : vector<8x8xf32> to vector<8xf32>
    %314 = vector.shape_cast %313 : vector<8xf32> to vector<8x1xf32>
    %315 = vector.broadcast %314 : vector<8x1xf32> to vector<8x8xf32>
    %316 = arith.divf %312, %315 : vector<8x8xf32>
    %cst_137 = arith.constant dense<0.000000e+00> : vector<8x16xf32>
    %317 = tpu.matmul %316, %302, %cst_137 {dimension_numbers = #tpu.dot_dimension_numbers<[1], [0], [0], [1], [0, 0, 1, 1], [], []>} : vector<8x8xf32>, vector<8x16xf32>, vector<8x16xf32> -> vector<8x16xf32>
    %318 = vector.extract_strided_slice %247 {offsets = [0, 0], sizes = [16, 32], strides = [1, 1]} : vector<32x32xf32> to vector<16x32xf32>
    %cst_138 = arith.constant dense<0.000000e+00> : vector<8x32xf32>
    %319 = tpu.matmul %317, %318, %cst_138 {dimension_numbers = #tpu.dot_dimension_numbers<[1], [0], [0], [1], [0, 0, 1, 1], [], []>} : vector<8x16xf32>, vector<16x32xf32>, vector<8x32xf32> -> vector<8x32xf32>
    %320 = arith.addf %299, %319 : vector<8x32xf32>
    %321 = vector.extract_strided_slice %252 {offsets = [8, 16], sizes = [8, 16], strides = [1, 1]} : vector<16x96xf32> to vector<8x16xf32>
    %322 = vector.extract_strided_slice %252 {offsets = [8, 48], sizes = [8, 16], strides = [1, 1]} : vector<16x96xf32> to vector<8x16xf32>
    %323 = vector.extract_strided_slice %252 {offsets = [8, 80], sizes = [8, 16], strides = [1, 1]} : vector<16x96xf32> to vector<8x16xf32>
    %cst_139 = arith.constant dense<0.000000e+00> : vector<8x8xf32>
    %324 = tpu.matmul %321, %322, %cst_139 {dimension_numbers = #tpu.dot_dimension_numbers<[1], [1], [0], [0], [0, 0, 1, 0], [], []>} : vector<8x16xf32>, vector<8x16xf32>, vector<8x8xf32> -> vector<8x8xf32>
    %cst_140 = arith.constant 2.500000e-01 : f32
    %325 = vector.broadcast %cst_140 : f32 to vector<8x8xf32>
    %326 = arith.mulf %324, %325 : vector<8x8xf32>
    %327 = vector.broadcast %298 : vector<1x8xf32> to vector<8x8xf32>
    %328 = arith.addf %326, %327 : vector<8x8xf32>
    %cst_141 = arith.constant dense<0xFF800000> : vector<8xf32>
    %329 = vector.multi_reduction <maximumf>, %328, %cst_141 [1] : vector<8x8xf32> to vector<8xf32>
    %330 = vector.shape_cast %329 : vector<8xf32> to vector<8x1xf32>
    %331 = vector.broadcast %330 : vector<8x1xf32> to vector<8x8xf32>
    %332 = arith.subf %328, %331 : vector<8x8xf32>
    %333 = math.exp %332 : vector<8x8xf32>
    %cst_142 = arith.constant dense<0.000000e+00> : vector<8xf32>
    %334 = vector.multi_reduction <add>, %333, %cst_142 [1] : vector<8x8xf32> to vector<8xf32>
    %335 = vector.shape_cast %334 : vector<8xf32> to vector<8x1xf32>
    %336 = vector.broadcast %335 : vector<8x1xf32> to vector<8x8xf32>
    %337 = arith.divf %333, %336 : vector<8x8xf32>
    %cst_143 = arith.constant dense<0.000000e+00> : vector<8x16xf32>
    %338 = tpu.matmul %337, %323, %cst_143 {dimension_numbers = #tpu.dot_dimension_numbers<[1], [0], [0], [1], [0, 0, 1, 1], [], []>} : vector<8x8xf32>, vector<8x16xf32>, vector<8x16xf32> -> vector<8x16xf32>
    %339 = vector.extract_strided_slice %247 {offsets = [16, 0], sizes = [16, 32], strides = [1, 1]} : vector<32x32xf32> to vector<16x32xf32>
    %cst_144 = arith.constant dense<0.000000e+00> : vector<8x32xf32>
    %340 = tpu.matmul %338, %339, %cst_144 {dimension_numbers = #tpu.dot_dimension_numbers<[1], [0], [0], [1], [0, 0, 1, 1], [], []>} : vector<8x16xf32>, vector<16x32xf32>, vector<8x32xf32> -> vector<8x32xf32>
    %341 = arith.addf %320, %340 : vector<8x32xf32>
    %c8_145 = arith.constant 8 : index
    %c0_146 = arith.constant 0 : index
    %342 = vector.load %arg22[%c8_145, %c0_146] : memref<16x32xf32, #tpu.memory_space<vmem>>, vector<8x32xf32>
    tpu.vector_store %arg22[%c8_145, %c0_146], %341 {strides = array<i32>} : memref<16x32xf32, #tpu.memory_space<vmem>>, vector<8x32xf32>,
    %c0_147 = arith.constant 0 : index
    %c0_148 = arith.constant 0 : index
    %343 = vector.load %arg22[%c0_147, %c0_148] : memref<16x32xf32, #tpu.memory_space<vmem>>, vector<16x32xf32>
    %c1_149 = arith.constant 1 : index
    %c0_150 = arith.constant 0 : index
    %c0_151 = arith.constant 0 : index
    %344 = vector.load %arg10[%c1_149, %c0_150, %c0_151] : memref<2x1x32xf32, #tpu.memory_space<vmem>>, vector<1x1x32xf32>
    %345 = vector.shape_cast %344 : vector<1x1x32xf32> to vector<1x32xf32>
    %346 = vector.broadcast %345 : vector<1x32xf32> to vector<16x32xf32>
    %347 = arith.addf %343, %346 : vector<16x32xf32>
    %348 = arith.addf %243, %347 : vector<16x32xf32>
    %c1_152 = arith.constant 1 : index
    %c0_153 = arith.constant 0 : index
    %c0_154 = arith.constant 0 : index
    %349 = vector.load %arg11[%c1_152, %c0_153, %c0_154] : memref<2x1x32xf32, #tpu.memory_space<vmem>>, vector<1x1x32xf32>
    %350 = vector.shape_cast %349 : vector<1x1x32xf32> to vector<1x32xf32>
    %c1_155 = arith.constant 1 : index
    %c0_156 = arith.constant 0 : index
    %c0_157 = arith.constant 0 : index
    %351 = vector.load %arg12[%c1_155, %c0_156, %c0_157] : memref<2x1x32xf32, #tpu.memory_space<vmem>>, vector<1x1x32xf32>
    %352 = vector.shape_cast %351 : vector<1x1x32xf32> to vector<1x32xf32>
    %cst_158 = arith.constant dense<0.000000e+00> : vector<16xf32>
    %353 = vector.multi_reduction <add>, %348, %cst_158 [1] : vector<16x32xf32> to vector<16xf32>
    %354 = vector.shape_cast %353 : vector<16xf32> to vector<16x1xf32>
    %cst_159 = arith.constant 3.200000e+01 : f32
    %355 = vector.broadcast %cst_159 : f32 to vector<16x1xf32>
    %356 = arith.divf %354, %355 : vector<16x1xf32>
    %357 = vector.broadcast %356 : vector<16x1xf32> to vector<16x32xf32>
    %358 = arith.subf %348, %357 : vector<16x32xf32>
    %359 = arith.mulf %358, %358 : vector<16x32xf32>
    %cst_160 = arith.constant dense<0.000000e+00> : vector<16xf32>
    %360 = vector.multi_reduction <add>, %359, %cst_160 [1] : vector<16x32xf32> to vector<16xf32>
    %361 = vector.shape_cast %360 : vector<16xf32> to vector<16x1xf32>
    %cst_161 = arith.constant 3.200000e+01 : f32
    %362 = vector.broadcast %cst_161 : f32 to vector<16x1xf32>
    %363 = arith.divf %361, %362 : vector<16x1xf32>
    %cst_162 = arith.constant 9.99999996E-13 : f32
    %364 = vector.broadcast %cst_162 : f32 to vector<16x1xf32>
    %365 = arith.addf %363, %364 : vector<16x1xf32>
    %366 = math.rsqrt %365 : vector<16x1xf32>
    %367 = vector.broadcast %366 : vector<16x1xf32> to vector<16x32xf32>
    %368 = arith.mulf %358, %367 : vector<16x32xf32>
    %369 = vector.broadcast %350 : vector<1x32xf32> to vector<16x32xf32>
    %370 = arith.mulf %368, %369 : vector<16x32xf32>
    %371 = vector.broadcast %352 : vector<1x32xf32> to vector<16x32xf32>
    %372 = arith.addf %370, %371 : vector<16x32xf32>
    %c1_163 = arith.constant 1 : index
    %c0_164 = arith.constant 0 : index
    %c0_165 = arith.constant 0 : index
    %373 = vector.load %arg13[%c1_163, %c0_164, %c0_165] : memref<2x32x64xf32, #tpu.memory_space<vmem>>, vector<1x32x64xf32>
    %374 = vector.shape_cast %373 : vector<1x32x64xf32> to vector<32x64xf32>
    %cst_166 = arith.constant dense<0.000000e+00> : vector<16x64xf32>
    %375 = tpu.matmul %372, %374, %cst_166 {dimension_numbers = #tpu.dot_dimension_numbers<[1], [0], [0], [1], [0, 0, 1, 1], [], []>} : vector<16x32xf32>, vector<32x64xf32>, vector<16x64xf32> -> vector<16x64xf32>
    %c1_167 = arith.constant 1 : index
    %c0_168 = arith.constant 0 : index
    %c0_169 = arith.constant 0 : index
    %376 = vector.load %arg14[%c1_167, %c0_168, %c0_169] : memref<2x1x64xf32, #tpu.memory_space<vmem>>, vector<1x1x64xf32>
    %377 = vector.shape_cast %376 : vector<1x1x64xf32> to vector<1x64xf32>
    %378 = vector.broadcast %377 : vector<1x64xf32> to vector<16x64xf32>
    %379 = arith.addf %375, %378 : vector<16x64xf32>
    %380 = arith.mulf %379, %379 : vector<16x64xf32>
    %381 = arith.mulf %379, %380 : vector<16x64xf32>
    %cst_170 = arith.constant 4.471500e-02 : f32
    %382 = vector.broadcast %cst_170 : f32 to vector<16x64xf32>
    %383 = arith.mulf %382, %381 : vector<16x64xf32>
    %384 = arith.addf %379, %383 : vector<16x64xf32>
    %cst_171 = arith.constant 0.797884583 : f32
    %385 = vector.broadcast %cst_171 : f32 to vector<16x64xf32>
    %386 = arith.mulf %385, %384 : vector<16x64xf32>
    %387 = math.tanh %386 : vector<16x64xf32>
    %cst_172 = arith.constant 1.000000e+00 : f32
    %388 = vector.broadcast %cst_172 : f32 to vector<16x64xf32>
    %389 = arith.addf %388, %387 : vector<16x64xf32>
    %cst_173 = arith.constant 5.000000e-01 : f32
    %390 = vector.broadcast %cst_173 : f32 to vector<16x64xf32>
    %391 = arith.mulf %390, %389 : vector<16x64xf32>
    %392 = arith.mulf %379, %391 : vector<16x64xf32>
    %c1_174 = arith.constant 1 : index
    %c0_175 = arith.constant 0 : index
    %c0_176 = arith.constant 0 : index
    %393 = vector.load %arg15[%c1_174, %c0_175, %c0_176] : memref<2x64x32xf32, #tpu.memory_space<vmem>>, vector<1x64x32xf32>
    %394 = vector.shape_cast %393 : vector<1x64x32xf32> to vector<64x32xf32>
    %cst_177 = arith.constant dense<0.000000e+00> : vector<16x32xf32>
    %395 = tpu.matmul %392, %394, %cst_177 {dimension_numbers = #tpu.dot_dimension_numbers<[1], [0], [0], [1], [0, 0, 1, 1], [], []>} : vector<16x64xf32>, vector<64x32xf32>, vector<16x32xf32> -> vector<16x32xf32>
    %c1_178 = arith.constant 1 : index
    %c0_179 = arith.constant 0 : index
    %c0_180 = arith.constant 0 : index
    %396 = vector.load %arg16[%c1_178, %c0_179, %c0_180] : memref<2x1x32xf32, #tpu.memory_space<vmem>>, vector<1x1x32xf32>
    %397 = vector.shape_cast %396 : vector<1x1x32xf32> to vector<1x32xf32>
    %398 = vector.broadcast %397 : vector<1x32xf32> to vector<16x32xf32>
    %399 = arith.addf %395, %398 : vector<16x32xf32>
    %400 = arith.addf %372, %399 : vector<16x32xf32>
    %c1_181 = arith.constant 1 : index
    %c0_182 = arith.constant 0 : index
    %c0_183 = arith.constant 0 : index
    %401 = vector.load %arg17[%c1_181, %c0_182, %c0_183] : memref<2x1x32xf32, #tpu.memory_space<vmem>>, vector<1x1x32xf32>
    %402 = vector.shape_cast %401 : vector<1x1x32xf32> to vector<1x32xf32>
    %c1_184 = arith.constant 1 : index
    %c0_185 = arith.constant 0 : index
    %c0_186 = arith.constant 0 : index
    %403 = vector.load %arg18[%c1_184, %c0_185, %c0_186] : memref<2x1x32xf32, #tpu.memory_space<vmem>>, vector<1x1x32xf32>
    %404 = vector.shape_cast %403 : vector<1x1x32xf32> to vector<1x32xf32>
    %cst_187 = arith.constant dense<0.000000e+00> : vector<16xf32>
    %405 = vector.multi_reduction <add>, %400, %cst_187 [1] : vector<16x32xf32> to vector<16xf32>
    %406 = vector.shape_cast %405 : vector<16xf32> to vector<16x1xf32>
    %cst_188 = arith.constant 3.200000e+01 : f32
    %407 = vector.broadcast %cst_188 : f32 to vector<16x1xf32>
    %408 = arith.divf %406, %407 : vector<16x1xf32>
    %409 = vector.broadcast %408 : vector<16x1xf32> to vector<16x32xf32>
    %410 = arith.subf %400, %409 : vector<16x32xf32>
    %411 = arith.mulf %410, %410 : vector<16x32xf32>
    %cst_189 = arith.constant dense<0.000000e+00> : vector<16xf32>
    %412 = vector.multi_reduction <add>, %411, %cst_189 [1] : vector<16x32xf32> to vector<16xf32>
    %413 = vector.shape_cast %412 : vector<16xf32> to vector<16x1xf32>
    %cst_190 = arith.constant 3.200000e+01 : f32
    %414 = vector.broadcast %cst_190 : f32 to vector<16x1xf32>
    %415 = arith.divf %413, %414 : vector<16x1xf32>
    %cst_191 = arith.constant 9.99999996E-13 : f32
    %416 = vector.broadcast %cst_191 : f32 to vector<16x1xf32>
    %417 = arith.addf %415, %416 : vector<16x1xf32>
    %418 = math.rsqrt %417 : vector<16x1xf32>
    %419 = vector.broadcast %418 : vector<16x1xf32> to vector<16x32xf32>
    %420 = arith.mulf %410, %419 : vector<16x32xf32>
    %421 = vector.broadcast %402 : vector<1x32xf32> to vector<16x32xf32>
    %422 = arith.mulf %420, %421 : vector<16x32xf32>
    %423 = vector.broadcast %404 : vector<1x32xf32> to vector<16x32xf32>
    %424 = arith.addf %422, %423 : vector<16x32xf32>
    %c0_192 = arith.constant 0 : index
    %c0_193 = arith.constant 0 : index
    %425 = vector.load %arg19[%c0_192, %c0_193] : memref<32x128xf32, #tpu.memory_space<vmem>>, vector<32x128xf32>
    %cst_194 = arith.constant dense<0.000000e+00> : vector<16x128xf32>
    %426 = tpu.matmul %424, %425, %cst_194 {dimension_numbers = #tpu.dot_dimension_numbers<[1], [0], [0], [1], [0, 0, 1, 1], [], []>} : vector<16x32xf32>, vector<32x128xf32>, vector<16x128xf32> -> vector<16x128xf32>
    %c0_195 = arith.constant 0 : index
    %c0_196 = arith.constant 0 : index
    %427 = vector.load %arg20[%c0_195, %c0_196] : memref<1x128xf32, #tpu.memory_space<vmem>>, vector<1x128xf32>
    %428 = vector.broadcast %427 : vector<1x128xf32> to vector<16x128xf32>
    %429 = arith.addf %426, %428 : vector<16x128xf32>
    %c0_197 = arith.constant 0 : index
    %c0_198 = arith.constant 0 : index
    %430 = vector.load %arg21[%c0_197, %c0_198] : memref<16x128xf32, #tpu.memory_space<vmem>>, vector<16x128xf32>
    tpu.vector_store %arg21[%c0_197, %c0_198], %429 {strides = array<i32>} : memref<16x128xf32, #tpu.memory_space<vmem>>, vector<16x128xf32>,
    return
  }
}

</mosaic_0001>

<bundles_post_ra>
// kernel: bert_classifier_forward.1
= control target key start
LH: loop header
LB: loop body
LE: loop exit
PB: predicated region body
PF: predicated region fallthrough
CT: control target
= control target key end

     0   :  { %v70_v0 = vlaneseq  ;;  %v3766_v1 = vmov 0   ;;  %vm134_vm1 = vcmask 64512   ;;  %v3767_v15 = vmov 0.0   ;;  %s3772_s29 = smov 112   ;;  %s4424_s0 = inlined_call_operand.vmem [shape: s32[16,1], index: 0, kind: input, shape index: {}]   ;;  %s4425_s2 = inlined_call_operand.vmem [shape: f32[128,32], index: 2, kind: input, shape index: {}]   ;;  %s4426_s3 = inlined_call_operand.vmem [shape: f32[8,32], index: 3, kind: input, shape index: {}]   ;;  %s4427_s4 = inlined_call_operand.vmem [shape: f32[2,32], index: 4, kind: input, shape index: {}]   ;;  %s4428_s7 = inlined_call_operand.vmem [shape: f32[2,32,96], index: 7, kind: input, shape index: {}]   ;;  %s4429_s5 = inlined_call_operand.vmem [shape: f32[1,32], index: 5, kind: input, shape index: {}]   ;;  %s4430_s6 = inlined_call_operand.vmem [shape: f32[1,32], index: 6, kind: input, shape index: {}]   ;;  %s4431_s8 = inlined_call_operand.vmem [shape: f32[2,1,96], index: 8, kind: input, shape index: {}]   ;;  %s4432_s1 = inlined_call_operand.vmem [shape: s32[2,8], index: 1, kind: input, shape index: {}]   ;;  %s4433_s9 = inlined_call_operand.vmem [shape: f32[2,32,32], index: 9, kind: input, shape index: {}]   ;;  %s4434_s10 = inlined_call_operand.vmem [shape: f32[2,1,32], index: 10, kind: input, shape index: {}]   ;;  %s4435_s11 = inlined_call_operand.vmem [shape: f32[2,1,32], index: 11, kind: input, shape index: {}]   ;;  %s4436_s12 = inlined_call_operand.vmem [shape: f32[2,1,32], index: 12, kind: input, shape index: {}]   ;;  %s4437_s13 = inlined_call_operand.vmem [shape: f32[2,32,64], index: 13, kind: input, shape index: {}]   ;;  %s4438_s15 = inlined_call_operand.vmem [shape: f32[2,64,32], index: 15, kind: input, shape index: {}]   ;;  %s4439_s14 = inlined_call_operand.vmem [shape: f32[2,1,64], index: 14, kind: input, shape index: {}]   ;;  %s4440_s16 = inlined_call_operand.vmem [shape: f32[2,1,32], index: 16, kind: input, shape index: {}]   ;;  %s4441_s17 = inlined_call_operand.vmem [shape: f32[2,1,32], index: 17, kind: input, shape index: {}]   ;;  %s4442_s18 = inlined_call_operand.vmem [shape: f32[2,1,32], index: 18, kind: input, shape index: {}]   ;;  %s4443_s19 = inlined_call_operand.vmem [shape: f32[32,128], index: 19, kind: input, shape index: {}]   ;;  %s4444_s20 = inlined_call_operand.vmem [shape: f32[1,128], index: 20, kind: input, shape index: {}]   ;;  %s4445_s21 = inlined_call_operand.vmem [shape: f32[16,128], index: 21, kind: output, shape index: {}]  }
   0x1   :  { %4449 = sst [smem:[#allocation3_spill]] %s4424_s0  ;;  %3705 = vset.pattern.permute.xlu0 %v3766_v1  ;;  %v3768_v30 = vmov 1.0   ;;  %vm300_vm5 = vcmask 261120   ;;  %vm3769_vm6 = vmmov 0   ;;  %vm447_vm7 = vcmask 130048   ;;  %s3774_s0 = smov 48  }
   0x2   :  { %4450 = sst [smem:[#allocation4_spill]] %s4425_s2  ;;  %v3894_v5 = vand.u32 127, %v70_v0  ;;  %v3896_v6 = vshrl.u32 %v70_v0, 7  ;;  %vm1595_vm8 = vcmask 523264  }
   0x3   :  { %4451 = sst [smem:[#allocation5_spill]] %s4426_s3  ;;  %s3770_s3 = smov 64  }
   0x4   :  { %4452 = sst [smem:[#allocation6_spill]] %s4427_s4  ;;  %v107_v9 = vand.u32 7, %v3896_v6  ;;  %v102_v10 = vadd.s32 8, %v3896_v6 }
   0x5   :  { %4453 = sst [smem:[#allocation7_spill]] %s4428_s7 }
   0x6   :  { %4454 = sst [smem:[#allocation8_spill]] %s4429_s5  ;;  %vm127_vm0 = vcmp.eq.s32.totalorder %v107_v9, %v3894_v5  ;;  %v114_v13 = vand.u32 7, %v102_v10  ;;  %v3209_v10 = vld [vmem:[%s4431_s8] ss:$0 sm:$0xff] }
   0x7   :  { %s4455_s26 = sld [smem:[#allocation3_spill]]  ;;  %v3200_v16 = vsel %vm127_vm0, 1.0, %v3767_v15 }
   0x8   :  { %s4456_s28 = sld [smem:[#allocation4_spill]]  ;;  %vm128_vm2 = vcmp.eq.s32.totalorder %v114_v13, %v3894_v5  ;;  %3429 = vmatprep.mubr.msk.f32.mxu0 %vm134_vm1, %v3200_v16 }
   0x9   :  { %s4457_s25 = sld [smem:[#allocation5_spill]]  ;;  %v3201_v18 = vsel %vm128_vm2, 1.0, %v3767_v15 }
   0xa   :  { %s4458_s24 = sld [smem:[#allocation6_spill]] }
   0xb   :  { %s4460_s23 = sld [smem:[#allocation8_spill]] }
   0xd   :  { %v68_v2 = vld [vmem:[%s4455_s26] sm:$0xff]  ;;  %v69_v7 = vld [vmem:[%s4455_s26 + $0x8] sm:$0xff]  ;;  %s4459_s26 = sld [smem:[#allocation7_spill]] }
   0xe   :  { %v99_v3 = vld [vmem:[%s4456_s28 + $0x78] sm:$0xff]  ;;  %73 = vperm.xlu0 %3705, %v68_v2   ;;  %v98_v4 = vld [vmem:[%s4456_s28 + $0x70] sm:$0xff]  ;;  %v97_v8 = vld [vmem:[%s4456_s28 + $0x68] sm:$0xff] }
   0xf   :  { %3432 = vmatprep.subr.mxu1 %v99_v3  ;;  %v96_v11 = vld [vmem:[%s4456_s28 + $0x60] sm:$0xff]  ;;  %v95_v14 = vld [vmem:[%s4456_s28 + $0x58] sm:$0xff]  ;;  %v94_v17 = vld [vmem:[%s4456_s28 + $0x50] sm:$0xff] }
  0x10   :  { %3433 = vmatpush3.msra.mxu1 %v99_v3  ;;  %v133_v12 = vld [vmem:[%s4457_s25] sm:$0xff]  ;;  %v93_v19 = vld [vmem:[%s4456_s28 + $0x48] sm:$0xff]  ;;  %v91_v21 = vld [vmem:[%s4456_s28 + $0x38] sm:$0xff]  ;;  %s3771_s25 = smov 96  }
  0x11   :  { %3434 = vmatprep.subr.mxu1 %v98_v4  ;;  %3427 = vmatprep.subr.mxu0 %v133_v12  ;;  %v92_v20 = vld [vmem:[%s4456_s28 + $0x40] sm:$0xff]  ;;  %v90_v22 = vld [vmem:[%s4456_s28 + $0x30] sm:$0xff]  ;;  %v89_v23 = vld [vmem:[%s4456_s28 + $0x28] sm:$0xff] }
  0x12   :  { %3435 = vmatpush3.msra.mxu1 %v98_v4  ;;  %76 = vperm.xlu0 %3705, %v69_v7   ;;  %v88_v24 = vld [vmem:[%s4456_s28 + $0x20] sm:$0xff]  ;;  %v87_v25 = vld [vmem:[%s4456_s28 + $0x18] sm:$0xff]  ;;  %v86_v26 = vld [vmem:[%s4456_s28 + $0x10] sm:$0xff] }
  0x13   :  { %3436 = vmatprep.subr.mxu1 %v97_v8  ;;  %3428 = vmatpush3.msra.mxu0 %v133_v12  ;;  %v85_v27 = vld [vmem:[%s4456_s28 + $0x8] sm:$0xff]  ;;  %v84_v28 = vld [vmem:[%s4456_s28] sm:$0xff]  ;;  %v351_v53 = vld [vmem:[%s4459_s26 + $0x18] sm:$0xff] }
  0x14   :  { %3437 = vmatpush3.msra.mxu1 %v97_v8  ;;  %3430 = vmatmul.mubr.msk.f32.vlgmr.msra.gmra.mxu0 %vm134_vm1, %v3201_v18  ;;  %v3206_v38 = vld [vmem:[%s4458_s24] ss:$0 sm:$0xff]  ;;  %v350_v54 = vld [vmem:[%s4459_s26 + $0x10] sm:$0xff]  ;;  %v349_v55 = vld [vmem:[%s4459_s26 + $0x8] sm:$0xff] }
  0x15   :  { %3438 = vmatprep.subr.mxu1 %v96_v11  ;;  %3467 = vmatprep.subr.mxu0 %v351_v53  ;;  %v348_v56 = vld [vmem:[%s4459_s26] sm:$0xff] }
  0x16   :  { %3439 = vmatpush3.msra.mxu1 %v96_v11  ;;  %3468 = vmatpush3.msra.mxu0 %v351_v53  ;;  %v3207_v0 = vld [vmem:[%s4460_s23] ss:$0 sm:$0xff] }
  0x17   :  { %3440 = vmatprep.subr.mxu1 %v95_v14  ;;  %3469 = vmatprep.subr.mxu0 %v350_v54  ;;  %v3208_v2 = vld [vmem:[%s4430_s6] ss:$0 sm:$0xff] }
  0x18   :  { %3441 = vmatpush3.msra.mxu1 %v95_v14  ;;  %3470 = vmatpush3.msra.mxu0 %v350_v54  ;;  %v344_v18 = vld [vmem:[%s4432_s1] sm:$0x3]  ;;  %s3773_s1 = smov 80  }
  0x19   :  { %3442 = vmatprep.subr.mxu1 %v94_v17  ;;  %3471 = vmatprep.subr.mxu0 %v349_v55 }
  0x1a   :  { %3443 = vmatpush3.msra.mxu1 %v94_v17  ;;  %3472 = vmatpush3.msra.mxu0 %v349_v55 }
  0x1b   :  { %3444 = vmatprep.subr.mxu1 %v93_v19  ;;  %3473 = vmatprep.subr.mxu0 %v348_v56 }
  0x1c   :  { %3445 = vmatpush3.msra.mxu1 %v93_v19  ;;  %3474 = vmatpush3.msra.mxu0 %v348_v56  ;;  %v345_v19 = vcvt.s32.f32 %v344_v18 }
  0x1d   :  { %3446 = vmatprep.subr.mxu1 %v92_v20  ;;  %3478 = vmatprep.subr.mxu0 %v3767_v15 }
  0x1e   :  { %3447 = vmatpush3.msra.mxu1 %v92_v20  ;;  %v346_v20 = vsub.f32 1.0, %v345_v19 }
  0x1f   :  { %3448 = vmatprep.subr.mxu1 %v91_v21 }
  0x20   :  { %3449 = vmatpush3.msra.mxu1 %v91_v21  ;;  %v4016_v21 = vmul.f32 -10000.0, %v346_v20  ;;  %v355_v20 = vld [vmem:[%s4433_s9 + $0x18] sm:$0xff] }
  0x21   :  { %3450 = vmatprep.subr.mxu1 %v90_v22 }
  0x22   :  { %3451 = vmatpush3.msra.mxu1 %v90_v22  ;;  %v525_v22 = vsub.s32 0, %v3896_v6 }
  0x23   :  { %3452 = vmatprep.subr.mxu1 %v89_v23 }
  0x24   :  { %3453 = vmatpush3.msra.mxu1 %v89_v23  ;;  %v4020_v23 = vrot.slane %v4016_v21, %v525_v22 }
  0x25   :  { %3454 = vmatprep.subr.mxu1 %v88_v24 }
  0x26   :  { %3455 = vmatpush3.msra.mxu1 %v88_v24 }
  0x27   :  { %3456 = vmatprep.subr.mxu1 %v87_v25 }
  0x28   :  { %3457 = vmatpush3.msra.mxu1 %v87_v25 }
  0x29   :  { %3458 = vmatprep.subr.mxu1 %v86_v26 }
  0x2a   :  { %3459 = vmatpush3.msra.mxu1 %v86_v26 }
  0x2b   :  { %3460 = vmatprep.subr.mxu1 %v85_v27 }
  0x2c   :  { %3461 = vmatpush3.msra.mxu1 %v85_v27 }
  0x2d   :  { %3462 = vmatprep.subr.mxu1 %v84_v28 }
  0x2e   :  { %3463 = vmatpush3.msra.mxu1 %v84_v28 }
  0x2f   :  { %3512 = vmatprep.subr.mxu1 %v3767_v15 }
  0x89   :  { %v74_v29 = vpop.permute.xlu0 %73 }
  0x8a   :  { %vm78_vm3 = vcmp.eq.s32.totalorder %v74_v29, %v3894_v5 }
  0x8b   :  { %3464 = vmatprep.mubr.msk.f32.mxu1 %vm78_vm3, %v3768_v30 }
  0x8d   :  { %v77_v31 = vpop.permute.xlu0 %76 }
  0x8e   :  { %vm79_vm4 = vcmp.eq.s32.totalorder %v77_v31, %v3894_v5 }
  0x8f   :  { %3465 = vmatmul.mubr.msk.f32.vlgmr.msra.gmra.mxu1 %vm79_vm4, %v3768_v30 }
  0x90   :  { %3514 = vmatprep.mubr.msk.f32.mxu1 %vm3769_vm6, %v3767_v15 }
  0xd4   :  { %v3431_v32 = vpop.f32.mrf.mxu0 }
  0xd6   :  { %v207_v34 = vpop.f32.mrf.mxu0 }
 0x14f   :  { %v3466_v33 = vpop.f32.mrf.mxu1 }
 0x150   :  { %v288_v36 = vadd.f32 %v3466_v33, %v3431_v32 }
 0x151   :  { %v282_v35 = vpop.f32.mrf.mxu1 }
 0x152   :  { %v283_v37 = vadd.f32 %v282_v35, %v207_v34  ;;  %v297_v41 = vadd.f32 %v3206_v38, %v288_v36 }
 0x154   :  { %v296_v39 = vadd.f32 %v3206_v38, %v283_v37  ;;  %v304_v42 = vsel %vm300_vm5, %v297_v41, 0.0 }
 0x156   :  { %v301_v40 = vsel %vm300_vm5, %v296_v39, 0.0 }
 0x157   :  { %302 = vadd.xlane.f32.xlu1 %v301_v40 }
 0x15b   :  { %305 = vadd.xlane.f32.xlu1 %v304_v42 }
 0x1e0   :  { %v303_v43 = vpop.xlane.xlu1 %302 }
 0x1e1   :  { %v308_v44 = vmul.f32 0.03125, %v303_v43 }
 0x1e3   :  { %v310_v45 = vsub.f32 %v296_v39, %v308_v44 }
 0x1e4   :  { %v306_v46 = vpop.xlane.xlu1 %305 }
 0x1e5   :  { %v309_v47 = vmul.f32 0.03125, %v306_v46  ;;  %v312_v48 = vmul.f32 %v310_v45, %v310_v45 }
 0x1e7   :  { %v311_v49 = vsub.f32 %v297_v41, %v309_v47  ;;  %v314_v50 = vsel %vm300_vm5, %v312_v48, 0.0 }
 0x1e8   :  { %315 = vadd.xlane.f32.xlu0 %v314_v50 }
 0x1e9   :  { %v313_v51 = vmul.f32 %v311_v49, %v311_v49 }
 0x1eb   :  { %v317_v52 = vsel %vm300_vm5, %v313_v51, 0.0 }
 0x1ec   :  { %318 = vadd.xlane.f32.xlu1 %v317_v52 }
 0x271   :  { %v316_v57 = vpop.xlane.xlu0 %315 }
 0x272   :  { %v320_v58 = vmul.f32 0.03125, %v316_v57  ;;  %v1009_v57 = vsub.s32 1, %v3896_v6 }
 0x274   :  { %v322_v59 = vadd.f32 1e-12, %v320_v58 }
 0x275   :  { %v319_v60 = vpop.xlane.xlu1 %318 }
 0x276   :  { %3706 = vrsqrt.f32 %v322_v59  ;;  %v321_v61 = vmul.f32 0.03125, %v319_v60  ;;  %v4065_v59 = vrot.slane %v4016_v21, %v1009_v57  ;;  %v354_v21 = vld [vmem:[%s4433_s9 + $0x10] sm:$0xff] }
 0x278   :  { %v323_v62 = vadd.f32 1e-12, %v321_v61 }
 0x27a   :  { %3708 = vrsqrt.f32 %v323_v62 }
 0x283   :  { %v3707_v63 = vpop.eup %3706 }
 0x284   :  { %v326_v1 = vmul.f32 %v3707_v63, %v310_v45 }
 0x286   :  { %v334_v3 = vmul.f32 %v3207_v0, %v326_v1 }
 0x287   :  { %v3709_v4 = vpop.eup %3708 }
 0x288   :  { %v327_v5 = vmul.f32 %v3709_v4, %v311_v49  ;;  %v3983_v7 = vadd.f32 %v3208_v2, %v334_v3 }
 0x28a   :  { %v335_v8 = vmul.f32 %v3207_v0, %v327_v5  ;;  %3475 = vmatprep.mubr.msk.f32.mxu0 %vm300_vm5, %v3983_v7 }
 0x28c   :  { %v3987_v9 = vadd.f32 %v3208_v2, %v335_v8 }
 0x28e   :  { %3476 = vmatmul.mubr.msk.f32.vlgmr.msra.gmra.mxu0 %vm300_vm5, %v3987_v9 }
 0x28f   :  { %3480 = vmatprep.mubr.msk.f32.mxu0 %vm3769_vm6, %v3767_v15 }
 0x34e   :  { %v3477_v11 = vpop.f32.mrf.mxu0 }
 0x34f   :  { %v3998_v12 = vadd.f32 %v3477_v11, %v3209_v10 }
 0x350   :  { %v435_v13 = vpop.f32.mrf.mxu0 }
 0x351   :  { %v4000_v14 = vadd.f32 %v3209_v10, %v435_v13 }
 0x353   :  { %539 = vrot.lane.b32.xlu0 %v4000_v14, %s3770_s3  ;;  %445 = vrot.lane.b32.xlu1 %v4000_v14, %s3771_s25 }
 0x3c5   :  { %v446_v16 = vpop.permute.xlu1 %445  ;;  %v540_v17 = vpop.permute.xlu0 %539 }
 0x3c6   :  { %3479 = vmatpush3.xpose.msk.msra.mxu0 %vm447_vm7, %v446_v16 }
 0x3c7   :  { %3483 = vmatprep.subr.mxu0 %v3767_v15 }
 0x3c9   :  { %3481 = vmatmul.mubr.msk.f32.vlgmr.msra.gmra.mxu0 %vm447_vm7, %v4000_v14 }
 0x3ca   :  { %3484 = vmatpush3.msra.mxu0 %v540_v17  ;;  %3485 = vmatprep.mubr.msk.f32.mxu0 %vm3769_vm6, %v3767_v15 }
 0x3cb   :  { %3488 = vmatprep.subr.mxu0 %v3767_v15 }
 0x489   :  { %v518_v24 = vpop.f32.mrf.mxu0 }
 0x48a   :  { %v522_v25 = vmul.f32 0.25, %v518_v24 }
 0x48b   :  { %v3482_v26 = vpop.f32.mrf.mxu0 }
 0x48c   :  { %v527_v27 = vadd.f32 %v4020_v23, %v522_v25  ;;  %v353_v25 = vld [vmem:[%s4433_s9 + $0x8] sm:$0xff] }
 0x48e   :  { %v528_v28 = vsel %vm134_vm1, %v527_v27, -inf }
 0x48f   :  { %529 = vmax.xlane.f32.xlu1 %v528_v28 }
 0x4a0   :  { %615 = vrot.lane.b32.xlu1 %v4000_v14, %s3772_s29 }
 0x518   :  { %v530_v29 = vpop.xlane.xlu1 %529 }
 0x519   :  { %v531_v30 = vsub.f32 %v527_v27, %v530_v29  ;;  %v352_v27 = vld [vmem:[%s4433_s9] sm:$0xff] }
 0x51b   :  { %v532_v31 = vmul.f32 1.442695, %v531_v30 }
 0x51c   :  { %v616_v41 = vpop.permute.xlu1 %615 }
 0x51d   :  { %3710 = vpow2.f32 %v532_v31 }
 0x52a   :  { %v3711_v32 = vpop.eup %3710 }
 0x52b   :  { %v534_v33 = vsel %vm134_vm1, %v3711_v32, 0.0 }
 0x52c   :  { %535 = vadd.xlane.f32.xlu0 %v534_v33 }
 0x542   :  { %617 = vrot.lane.b32.xlu0 %v4000_v14, %s3773_s1 }
 0x546   :  { %930 = vrot.lane.b32.xlu0 %v3998_v12, %s3771_s25 }
 0x54a   :  { %1101 = vrot.lane.b32.xlu0 %v3998_v12, %s3773_s1 }
 0x54e   :  { %1099 = vrot.lane.b32.xlu0 %v3998_v12, %s3772_s29 }
 0x5b5   :  { %v536_v34 = vpop.xlane.xlu0 %535 }
 0x5b6   :  { %3712 = vrcp.f32 %v536_v34 }
 0x5b9   :  { %v618_v35 = vpop.permute.xlu0 %617 }
 0x5bd   :  { %v931_v36 = vpop.permute.xlu0 %930 }
 0x5be   :  { %3513 = vmatpush3.xpose.msk.msra.mxu1 %vm447_vm7, %v931_v36 }
 0x5bf   :  { %3522 = vmatprep.subr.mxu1 %v3767_v15 }
 0x5c1   :  { %3515 = vmatmul.mubr.msk.f32.vlgmr.msra.gmra.mxu1 %vm447_vm7, %v3998_v12  ;;  %v1102_v37 = vpop.permute.xlu0 %1101 }
 0x5c2   :  { %3523 = vmatpush3.xpose.msk.msra.mxu1 %vm447_vm7, %v1102_v37  ;;  %3524 = vmatprep.mubr.msk.f32.mxu1 %vm3769_vm6, %v3767_v15 }
 0x5c3   :  { %v3713_v38 = vpop.eup %3712  ;;  %3532 = vmatprep.subr.mxu1 %v3767_v15 }
 0x5c4   :  { %v538_v39 = vmul.f32 %v3713_v38, %v3711_v32 }
 0x5c5   :  { %v1100_v40 = vpop.permute.xlu0 %1099 }
 0x5c6   :  { %3486 = vmatmul.mubr.msk.f32.vlgmr.msra.gmra.mxu0 %vm134_vm1, %v538_v39  ;;  %3525 = vmatmul.mubr.msk.f32.vlgmr.msra.gmra.mxu1 %vm447_vm7, %v1100_v40 }
 0x5c7   :  { %3489 = vmatpush3.xpose.msk.msra.mxu0 %vm447_vm7, %v618_v35  ;;  %3490 = vmatprep.mubr.msk.f32.mxu0 %vm3769_vm6, %v3767_v15 }
 0x5c8   :  { %3493 = vmatprep.subr.mxu0 %v3767_v15  ;;  %3536 = vmatprep.mubr.msk.f32.mxu1 %vm3769_vm6, %v3767_v15 }
 0x5c9   :  { %3533 = vmatpush3.msra.mxu1 %v355_v20 }
 0x5ca   :  { %3491 = vmatmul.mubr.msk.f32.vlgmr.msra.gmra.mxu0 %vm447_vm7, %v616_v41  ;;  %3534 = vmatprep.subr.mxu1 %v3767_v15 }
 0x5cb   :  { %3495 = vmatprep.mubr.msk.f32.mxu0 %vm3769_vm6, %v3767_v15  ;;  %3535 = vmatpush3.msra.mxu1 %v354_v21 }
 0x681   :  { %v1002_v42 = vpop.f32.mrf.mxu1 }
 0x682   :  { %v1006_v58 = vmul.f32 0.25, %v1002_v42  ;;  %v3228_v42 = vld [vmem:[%s4434_s10] ss:$0 sm:$0xff] }
 0x683   :  { %v3516_v43 = vpop.f32.mrf.mxu1 }
 0x684   :  { %v1011_v63 = vadd.f32 %v4065_v59, %v1006_v58 }
 0x686   :  { %v4054_v44 = vpop.f32.mrf.mxu0  ;;  %v1173_v45 = vpop.f32.mrf.mxu1  ;;  %v1012_v0 = vsel %vm134_vm1, %v1011_v63, -inf }
 0x687   :  { %v1177_v61 = vmul.f32 0.25, %v1173_v45 }
 0x688   :  { %v3487_v46 = vpop.f32.mrf.mxu0  ;;  %v3526_v47 = vpop.f32.mrf.mxu1 }
 0x689   :  { %v1178_v1 = vadd.f32 %v1177_v61, %v4065_v59 }
 0x68a   :  { %v689_v48 = vpop.f32.mrf.mxu0 }
 0x68b   :  { %v693_v49 = vmul.f32 0.25, %v689_v48  ;;  %v1179_v2 = vsel %vm134_vm1, %v1178_v1, -inf }
 0x68c   :  { %v3492_v50 = vpop.f32.mrf.mxu0 }
 0x68d   :  { %v694_v51 = vadd.f32 %v693_v49, %v4020_v23 }
 0x68f   :  { %v695_v52 = vsel %vm134_vm1, %v694_v51, -inf }
 0x690   :  { %696 = vmax.xlane.f32.xlu0 %v695_v52 }
 0x6a6   :  { %706 = vrot.lane.b32.xlu0 %v4000_v14, %s3774_s0 }
 0x6aa   :  { %1023 = vrot.lane.b32.xlu0 %v3998_v12, %s3770_s3 }
 0x719   :  { %v697_v53 = vpop.xlane.xlu0 %696 }
 0x71a   :  { %v698_v54 = vsub.f32 %v694_v51, %v697_v53 }
 0x71c   :  { %v699_v55 = vmul.f32 1.442695, %v698_v54 }
 0x71d   :  { %v707_v56 = vpop.permute.xlu0 %706 }
 0x71e   :  { %3714 = vpow2.f32 %v699_v55  ;;  %3494 = vmatpush3.msra.mxu0 %v707_v56 }
 0x71f   :  { %3498 = vmatprep.subr.mxu0 %v3767_v15 }
 0x721   :  { %v1024_v29 = vpop.permute.xlu0 %1023 }
 0x72b   :  { %v3715_v60 = vpop.eup %3714 }
 0x72c   :  { %v701_v62 = vsel %vm134_vm1, %v3715_v60, 0.0 }
 0x72d   :  { %702 = vadd.xlane.f32.xlu1 %v701_v62 }
 0x731   :  { %1013 = vmax.xlane.f32.xlu1 %v1012_v0 }
 0x735   :  { %1180 = vmax.xlane.f32.xlu1 %v1179_v2  ;;  %v3229_v2 = vld [vmem:[%s4435_s11] ss:$0 sm:$0xff] }
 0x7b6   :  { %v703_v6 = vpop.xlane.xlu1 %702 }
 0x7b7   :  { %3716 = vrcp.f32 %v703_v6 }
 0x7ba   :  { %v1014_v3 = vpop.xlane.xlu1 %1013 }
 0x7bb   :  { %v1015_v4 = vsub.f32 %v1011_v63, %v1014_v3  ;;  %v3230_v3 = vld [vmem:[%s4436_s12] ss:$0 sm:$0xff] }
 0x7bd   :  { %v1016_v5 = vmul.f32 1.442695, %v1015_v4 }
 0x7be   :  { %v1181_v8 = vpop.xlane.xlu1 %1180 }
 0x7bf   :  { %3718 = vpow2.f32 %v1016_v5  ;;  %v1182_v10 = vsub.f32 %v1178_v1, %v1181_v8 }
 0x7c1   :  { %v1183_v11 = vmul.f32 1.442695, %v1182_v10 }
 0x7c3   :  { %3720 = vpow2.f32 %v1183_v11 }
 0x7c4   :  { %v3717_v13 = vpop.eup %3716 }
 0x7c5   :  { %v705_v14 = vmul.f32 %v3717_v13, %v3715_v60 }
 0x7c7   :  { %3496 = vmatmul.mubr.msk.f32.vlgmr.msra.gmra.mxu0 %vm134_vm1, %v705_v14  ;;  %v1473_v14 = vld [vmem:[%s4437_s13 + $0x18] sm:$0xff] }
 0x7c8   :  { %3502 = vmatprep.mubr.msk.f32.mxu0 %vm3769_vm6, %v3767_v15  ;;  %3499 = vmatpush3.msra.mxu0 %v355_v20 }
 0x7c9   :  { %3500 = vmatprep.subr.mxu0 %v3767_v15  ;;  %3546 = vmatprep.subr.mxu1 %v1473_v14 }
 0x7ca   :  { %3501 = vmatpush3.msra.mxu0 %v354_v21 }
 0x7cb   :  { %3505 = vmatprep.subr.mxu0 %v3767_v15 }
 0x7cc   :  { %v3719_v16 = vpop.eup %3718 }
 0x7cd   :  { %v1018_v17 = vsel %vm134_vm1, %v3719_v16, 0.0 }
 0x7ce   :  { %1019 = vadd.xlane.f32.xlu1 %v1018_v17  ;;  %v1471_v17 = vld [vmem:[%s4437_s13 + $0x8] sm:$0xff] }
 0x7d0   :  { %v3721_v18 = vpop.eup %3720 }
 0x7d1   :  { %v1185_v19 = vsel %vm134_vm1, %v3721_v18, 0.0 }
 0x7d2   :  { %1186 = vadd.xlane.f32.xlu1 %v1185_v19 }
 0x7e3   :  { %1190 = vrot.lane.b32.xlu1 %v3998_v12, %s3774_s0 }
 0x857   :  { %v1020_v22 = vpop.xlane.xlu1 %1019 }
 0x858   :  { %3722 = vrcp.f32 %v1020_v22 }
 0x85b   :  { %v1187_v24 = vpop.xlane.xlu1 %1186 }
 0x85c   :  { %3724 = vrcp.f32 %v1187_v24 }
 0x85f   :  { %v1191_v32 = vpop.permute.xlu1 %1190 }
 0x865   :  { %v3723_v28 = vpop.eup %3722 }
 0x866   :  { %v1022_v30 = vmul.f32 %v3723_v28, %v3719_v16  ;;  %v1472_v16 = vld [vmem:[%s4437_s13 + $0x10] sm:$0xff]  ;;  %v1585_v28 = vld [vmem:[%s4438_s15 + $0x28] sm:$0xff] }
 0x869   :  { %v3725_v31 = vpop.eup %3724 }
 0x86a   :  { %v1189_v33 = vmul.f32 %v3725_v31, %v3721_v18  ;;  %v1470_v18 = vld [vmem:[%s4437_s13] sm:$0xff]  ;;  %v1582_v31 = vld [vmem:[%s4438_s15 + $0x10] sm:$0xff] }
 0x887   :  { %v778_v26 = vpop.f32.mrf.mxu0 }
 0x888   :  { %3503 = vmatmul.mubr.msk.f32.vlgmr.msra.gmra.mxu0 %vm447_vm7, %v778_v26 }
 0x889   :  { %3506 = vmatpush3.msra.mxu0 %v353_v25  ;;  %v3497_v12 = vpop.f32.mrf.mxu0  ;;  %3509 = vmatprep.mubr.msk.f32.mxu0 %vm3769_vm6, %v3767_v15 }
 0x88a   :  { %3507 = vmatprep.subr.mxu0 %v3767_v15  ;;  %v1586_v12 = vld [vmem:[%s4438_s15 + $0x30] sm:$0xff] }
 0x88b   :  { %3508 = vmatpush3.msra.mxu0 %v352_v27 }
 0x88c   :  { %3517 = vmatprep.subr.mxu0 %v3767_v15  ;;  %3510 = vmatmul.mubr.msk.f32.vlgmr.msra.gmra.mxu0 %vm447_vm7, %v4054_v44 }
 0x88d   :  { %3518 = vmatpush3.msra.mxu0 %v1024_v29  ;;  %3519 = vmatprep.mubr.msk.f32.mxu0 %vm3769_vm6, %v3767_v15  ;;  %v1584_v29 = vld [vmem:[%s4438_s15 + $0x20] sm:$0xff] }
 0x88e   :  { %3527 = vmatprep.subr.mxu0 %v3767_v15 }
 0x890   :  { %3520 = vmatmul.mubr.msk.f32.vlgmr.msra.gmra.mxu0 %vm134_vm1, %v1022_v30  ;;  %v1583_v30 = vld [vmem:[%s4438_s15 + $0x18] sm:$0xff] }
 0x891   :  { %3528 = vmatpush3.msra.mxu0 %v1191_v32  ;;  %3529 = vmatprep.mubr.msk.f32.mxu0 %vm3769_vm6, %v3767_v15  ;;  %v1581_v32 = vld [vmem:[%s4438_s15 + $0x8] sm:$0xff] }
 0x892   :  { %3539 = vmatprep.subr.mxu0 %v3767_v15 }
 0x894   :  { %3530 = vmatmul.mubr.msk.f32.vlgmr.msra.gmra.mxu0 %vm134_vm1, %v1189_v33  ;;  %v1580_v33 = vld [vmem:[%s4438_s15] sm:$0xff] }
 0x895   :  { %3540 = vmatpush3.msra.mxu0 %v353_v25  ;;  %3543 = vmatprep.mubr.msk.f32.mxu0 %vm3769_vm6, %v3767_v15 }
 0x896   :  { %3541 = vmatprep.subr.mxu0 %v3767_v15 }
 0x897   :  { %3542 = vmatpush3.msra.mxu0 %v352_v27  ;;  %v1587_v27 = vld [vmem:[%s4438_s15 + $0x38] sm:$0xff] }
 0x898   :  { %3557 = vmatprep.subr.mxu0 %v1587_v27 }
 0x948   :  { %v851_v34 = vpop.f32.mrf.mxu0 }
 0x94a   :  { %v3504_v35 = vpop.f32.mrf.mxu0 }
 0x94c   :  { %v924_v36 = vpop.f32.mrf.mxu0 }
 0x94d   :  { %v925_v37 = vadd.f32 %v924_v36, %v851_v34  ;;  %v3231_v34 = vld [vmem:[%s4439_s14] ss:$0 sm:$0xff] }
 0x94e   :  { %v3511_v38 = vpop.f32.mrf.mxu0 }
 0x94f   :  { %928 = vst.msk [vmem:[#allocation2] sm:$0xff] %vm300_vm5, %v925_v37 }
 0x950   :  { %v1095_v39 = vpop.f32.mrf.mxu0 }
 0x951   :  { %3544 = vmatmul.mubr.msk.f32.vlgmr.msra.gmra.mxu0 %vm447_vm7, %v1095_v39 }
 0x952   :  { %v3521_v40 = vpop.f32.mrf.mxu0  ;;  %3558 = vmatpush3.msra.mxu0 %v1587_v27  ;;  %v3237_v27 = vld [vmem:[%s4441_s17] ss:$0 sm:$0xff] }
 0x953   :  { %3559 = vmatprep.subr.mxu0 %v1586_v12 }
 0x954   :  { %v1262_v41 = vpop.f32.mrf.mxu0  ;;  %3560 = vmatpush3.msra.mxu0 %v1586_v12 }
 0x955   :  { %3537 = vmatmul.mubr.msk.f32.vlgmr.msra.gmra.mxu1 %vm447_vm7, %v1262_v41  ;;  %3561 = vmatprep.subr.mxu0 %v1585_v28 }
 0x956   :  { %v3531_v43 = vpop.f32.mrf.mxu0  ;;  %v1413_v44 = vld [vmem:[#allocation2] sm:$0xff]  ;;  %3547 = vmatpush3.msra.mxu1 %v1473_v14  ;;  %3562 = vmatpush3.msra.mxu0 %v1585_v28  ;;  %v3242_v14 = vld [vmem:[%s4459_s26 + $0x38] sm:$0xff] }
 0x957   :  { %v1422_v45 = vadd.f32 %v3228_v42, %v1413_v44  ;;  %3548 = vmatprep.subr.mxu1 %v1472_v16  ;;  %3563 = vmatprep.subr.mxu0 %v1584_v29  ;;  %v3238_v28 = vld [vmem:[%s4442_s18] ss:$0 sm:$0xff] }
 0x958   :  { %3549 = vmatpush3.msra.mxu1 %v1472_v16  ;;  %3564 = vmatpush3.msra.mxu0 %v1584_v29  ;;  %v3241_v16 = vld [vmem:[%s4459_s26 + $0x30] sm:$0xff] }
 0x959   :  { %v1424_v46 = vadd.f32 %v1422_v45, %v3983_v7  ;;  %3550 = vmatprep.subr.mxu1 %v1471_v17  ;;  %3565 = vmatprep.subr.mxu0 %v1583_v30 }
 0x95a   :  { %3551 = vmatpush3.msra.mxu1 %v1471_v17  ;;  %3566 = vmatpush3.msra.mxu0 %v1583_v30  ;;  %v3240_v17 = vld [vmem:[%s4459_s26 + $0x28] sm:$0xff] }
 0x95b   :  { %v1428_v47 = vsel %vm300_vm5, %v1424_v46, 0.0  ;;  %3552 = vmatprep.subr.mxu1 %v1470_v18  ;;  %3567 = vmatprep.subr.mxu0 %v1582_v31 }
 0x95c   :  { %1429 = vadd.xlane.f32.xlu0 %v1428_v47  ;;  %3553 = vmatpush3.msra.mxu1 %v1470_v18  ;;  %v3239_v18 = vld [vmem:[%s4459_s26 + $0x20] sm:$0xff] }
 0x95d   :  { %3568 = vmatpush3.msra.mxu0 %v1582_v31  ;;  %3576 = vmatprep.subr.mxu1 %v3242_v14 }
 0x95e   :  { %3569 = vmatprep.subr.mxu0 %v1581_v32 }
 0x95f   :  { %3570 = vmatpush3.msra.mxu0 %v1581_v32 }
 0x960   :  { %3571 = vmatprep.subr.mxu0 %v1580_v33 }
 0x961   :  { %3572 = vmatpush3.msra.mxu0 %v1580_v33 }
 0x962   :  { %3592 = vmatprep.subr.mxu0 %v3767_v15 }
 0x9e5   :  { %v1430_v48 = vpop.xlane.xlu0 %1429 }
 0x9e6   :  { %v1434_v49 = vmul.f32 0.03125, %v1430_v48 }
 0x9e8   :  { %v1436_v50 = vsub.f32 %v1424_v46, %v1434_v49 }
 0x9ea   :  { %v1438_v51 = vmul.f32 %v1436_v50, %v1436_v50 }
 0x9ec   :  { %v1440_v52 = vsel %vm300_vm5, %v1438_v51, 0.0 }
 0x9ed   :  { %1441 = vadd.xlane.f32.xlu0 %v1440_v52 }
 0xa11   :  { %v1408_v53 = vpop.f32.mrf.mxu0 }
 0xa13   :  { %v3545_v54 = vpop.f32.mrf.mxu0 }
 0xa15   :  { %v1335_v55 = vpop.f32.mrf.mxu1 }
 0xa16   :  { %v1409_v56 = vadd.f32 %v1408_v53, %v1335_v55 }
 0xa17   :  { %v3538_v57 = vpop.f32.mrf.mxu1 }
 0xa18   :  { %1412 = vst.msk [vmem:[#allocation2 + $0x8] sm:$0xff] %vm300_vm5, %v1409_v56 }
 0xa1f   :  { %v1414_v58 = vld [vmem:[#allocation2 + $0x8] sm:$0xff] }
 0xa20   :  { %v1423_v60 = vadd.f32 %v3228_v42, %v1414_v58  ;;  %v3234_v58 = vld [vmem:[%s4440_s16] ss:$0 sm:$0xff] }
 0xa22   :  { %v1425_v7 = vadd.f32 %v1423_v60, %v3987_v9 }
 0xa24   :  { %v1431_v61 = vsel %vm300_vm5, %v1425_v7, 0.0 }
 0xa25   :  { %1432 = vadd.xlane.f32.xlu1 %v1431_v61 }
 0xa76   :  { %v1442_v62 = vpop.xlane.xlu0 %1441 }
 0xa77   :  { %v1446_v63 = vmul.f32 0.03125, %v1442_v62 }
 0xa79   :  { %v1448_v0 = vadd.f32 1e-12, %v1446_v63 }
 0xa7b   :  { %3726 = vrsqrt.f32 %v1448_v0 }
 0xa88   :  { %v3727_v1 = vpop.eup %3726 }
 0xa89   :  { %v1452_v6 = vmul.f32 %v3727_v1, %v1436_v50 }
 0xa8b   :  { %v1460_v4 = vmul.f32 %v3229_v2, %v1452_v6 }
 0xa8d   :  { %v4130_v5 = vadd.f32 %v3230_v3, %v1460_v4 }
 0xa8f   :  { %3554 = vmatprep.mubr.msk.f32.mxu1 %vm300_vm5, %v4130_v5 }
 0xaae   :  { %v1433_v9 = vpop.xlane.xlu1 %1432 }
 0xaaf   :  { %v1435_v8 = vmul.f32 0.03125, %v1433_v9 }
 0xab1   :  { %v1437_v10 = vsub.f32 %v1425_v7, %v1435_v8 }
 0xab3   :  { %v1439_v11 = vmul.f32 %v1437_v10, %v1437_v10 }
 0xab5   :  { %v1443_v13 = vsel %vm300_vm5, %v1439_v11, 0.0 }
 0xab6   :  { %1444 = vadd.xlane.f32.xlu0 %v1443_v13 }
 0xb3f   :  { %v1445_v19 = vpop.xlane.xlu0 %1444 }
 0xb40   :  { %v1447_v20 = vmul.f32 0.03125, %v1445_v19 }
 0xb42   :  { %v1449_v21 = vadd.f32 1e-12, %v1447_v20 }
 0xb44   :  { %3728 = vrsqrt.f32 %v1449_v21 }
 0xb51   :  { %v3729_v22 = vpop.eup %3728 }
 0xb52   :  { %v1453_v24 = vmul.f32 %v3729_v22, %v1437_v10 }
 0xb54   :  { %v1461_v25 = vmul.f32 %v3229_v2, %v1453_v24 }
 0xb56   :  { %v4147_v26 = vadd.f32 %v3230_v3, %v1461_v25 }
 0xb58   :  { %3555 = vmatmul.mubr.msk.f32.vlgmr.msra.gmra.mxu1 %vm300_vm5, %v4147_v26 }
 0xb59   :  { %3577 = vmatpush3.msra.mxu1 %v3242_v14 }
 0xb5a   :  { %3578 = vmatprep.subr.mxu1 %v3241_v16 }
 0xb5b   :  { %3579 = vmatpush3.msra.mxu1 %v3241_v16 }
 0xb5c   :  { %3580 = vmatprep.subr.mxu1 %v3240_v17 }
 0xb5d   :  { %3581 = vmatpush3.msra.mxu1 %v3240_v17 }
 0xb5e   :  { %3582 = vmatprep.subr.mxu1 %v3239_v18 }
 0xb5f   :  { %3583 = vmatpush3.msra.mxu1 %v3239_v18 }
 0xb60   :  { %3587 = vmatprep.subr.mxu1 %v3767_v15 }
 0xc18   :  { %v3556_v35 = vpop.f32.mrf.mxu1 }
 0xc19   :  { %v1559_v36 = vadd.f32 %v3556_v35, %v3231_v34  ;;  %v3248_v35 = vld [vmem:[%s4431_s8 + $0x1] ss:$0 sm:$0xff] }
 0xc1a   :  { %v1553_v37 = vpop.f32.mrf.mxu1 }
 0xc1b   :  { %v1563_v38 = vmul.f32 %v1559_v36, %v1559_v36  ;;  %v1554_v39 = vadd.f32 %v3231_v34, %v1553_v37 }
 0xc1d   :  { %v1565_v40 = vmul.f32 %v1563_v38, %v1559_v36  ;;  %v1562_v41 = vmul.f32 %v1554_v39, %v1554_v39 }
 0xc1f   :  { %v1567_v42 = vmul.f32 0.044715, %v1565_v40  ;;  %v1564_v43 = vmul.f32 %v1562_v41, %v1554_v39 }
 0xc21   :  { %v1569_v44 = vadd.f32 %v1567_v42, %v1559_v36  ;;  %v1566_v45 = vmul.f32 0.044715, %v1564_v43 }
 0xc23   :  { %v1571_v46 = vmul.f32 0.7978846, %v1569_v44  ;;  %v1568_v47 = vadd.f32 %v1566_v45, %v1554_v39 }
 0xc25   :  { %3730 = vtanh.f32 %v1571_v46  ;;  %v1570_v48 = vmul.f32 0.7978846, %v1568_v47 }
 0xc27   :  { %3732 = vtanh.f32 %v1570_v48 }
 0xc32   :  { %v3731_v49 = vpop.eup %3730 }
 0xc33   :  { %v1575_v50 = vadd.f32 1.0, %v3731_v49 }
 0xc34   :  { %v3733_v51 = vpop.eup %3732 }
 0xc35   :  { %v1574_v52 = vadd.f32 1.0, %v3733_v51  ;;  %v1577_v53 = vmul.f32 0.5, %v1575_v50 }
 0xc37   :  { %v1576_v54 = vmul.f32 0.5, %v1574_v52  ;;  %v1579_v56 = vmul.f32 %v1577_v53, %v1559_v36 }
 0xc39   :  { %v1578_v55 = vmul.f32 %v1576_v54, %v1554_v39 }
 0xc3b   :  { %3573 = vmatprep.mubr.msk.f32.mxu0 %vm1595_vm8, %v1578_v55 }
 0xc3c   :  { %3574 = vmatmul.mubr.msk.f32.vlgmr.msra.gmra.mxu0 %vm1595_vm8, %v1579_v56 }
 0xc3d   :  { %3594 = vmatprep.mubr.msk.f32.mxu0 %vm3769_vm6, %v3767_v15 }
 0xcfc   :  { %v3575_v57 = vpop.f32.mrf.mxu0 }
 0xcfd   :  { %v1674_v7 = vadd.f32 %v3575_v57, %v3234_v58 }
 0xcfe   :  { %v1668_v60 = vpop.f32.mrf.mxu0 }
 0xcff   :  { %v1669_v61 = vadd.f32 %v3234_v58, %v1668_v60  ;;  %v1678_v0 = vadd.f32 %v1674_v7, %v4147_v26 }
 0xd01   :  { %v1677_v62 = vadd.f32 %v1669_v61, %v4130_v5  ;;  %v1684_v1 = vsel %vm300_vm5, %v1678_v0, 0.0 }
 0xd03   :  { %v1681_v63 = vsel %vm300_vm5, %v1677_v62, 0.0 }
 0xd04   :  { %1682 = vadd.xlane.f32.xlu0 %v1681_v63 }
 0xd08   :  { %1685 = vadd.xlane.f32.xlu0 %v1684_v1 }
 0xd8d   :  { %v1683_v2 = vpop.xlane.xlu0 %1682 }
 0xd8e   :  { %v1687_v6 = vmul.f32 0.03125, %v1683_v2 }
 0xd90   :  { %v1689_v3 = vsub.f32 %v1677_v62, %v1687_v6 }
 0xd91   :  { %v1686_v4 = vpop.xlane.xlu0 %1685 }
 0xd92   :  { %v1688_v9 = vmul.f32 0.03125, %v1686_v4  ;;  %v1691_v8 = vmul.f32 %v1689_v3, %v1689_v3 }
 0xd94   :  { %v1690_v10 = vsub.f32 %v1678_v0, %v1688_v9  ;;  %v1693_v11 = vsel %vm300_vm5, %v1691_v8, 0.0  ;;  %v4261_v9 = vld [vmem:[%s4433_s9 + $0x28] sm:$0xff]  ;;  %v4271_v8 = vld [vmem:[%s4433_s9 + $0x20] sm:$0xff] }
 0xd95   :  { %1694 = vadd.xlane.f32.xlu0 %v1693_v11  ;;  %v3245_v11 = vld [vmem:[%s4433_s9 + $0x30] sm:$0xff] }
 0xd96   :  { %v1692_v13 = vmul.f32 %v1690_v10, %v1690_v10 }
 0xd98   :  { %v1696_v5 = vsel %vm300_vm5, %v1692_v13, 0.0 }
 0xd99   :  { %1697 = vadd.xlane.f32.xlu1 %v1696_v5 }
 0xe1e   :  { %v1695_v19 = vpop.xlane.xlu0 %1694 }
 0xe1f   :  { %v1699_v20 = vmul.f32 0.03125, %v1695_v19 }
 0xe21   :  { %v1701_v21 = vadd.f32 1e-12, %v1699_v20 }
 0xe22   :  { %v1698_v22 = vpop.xlane.xlu1 %1697 }
 0xe23   :  { %3734 = vrsqrt.f32 %v1701_v21  ;;  %v1700_v24 = vmul.f32 0.03125, %v1698_v22 }
 0xe25   :  { %v1702_v25 = vadd.f32 1e-12, %v1700_v24 }
 0xe27   :  { %3736 = vrsqrt.f32 %v1702_v25 }
 0xe30   :  { %v3735_v26 = vpop.eup %3734 }
 0xe31   :  { %v1705_v12 = vmul.f32 %v3735_v26, %v1689_v3 }
 0xe33   :  { %v1713_v29 = vmul.f32 %v3237_v27, %v1705_v12 }
 0xe34   :  { %v3737_v30 = vpop.eup %3736 }
 0xe35   :  { %v1706_v31 = vmul.f32 %v3737_v30, %v1690_v10  ;;  %v4211_v32 = vadd.f32 %v3238_v28, %v1713_v29  ;;  %v3246_v10 = vld [vmem:[%s4433_s9 + $0x38] sm:$0xff] }
 0xe37   :  { %v1714_v33 = vmul.f32 %v3237_v27, %v1706_v31  ;;  %3584 = vmatprep.mubr.msk.f32.mxu1 %vm300_vm5, %v4211_v32 }
 0xe39   :  { %v4215_v34 = vadd.f32 %v3238_v28, %v1714_v33 }
 0xe3b   :  { %3585 = vmatmul.mubr.msk.f32.vlgmr.msra.gmra.mxu1 %vm300_vm5, %v4215_v34 }
 0xe3c   :  { %3589 = vmatprep.mubr.msk.f32.mxu1 %vm3769_vm6, %v3767_v15 }
 0xefb   :  { %v3586_v36 = vpop.f32.mrf.mxu1 }
 0xefc   :  { %v4224_v37 = vadd.f32 %v3586_v36, %v3248_v35 }
 0xefd   :  { %v1813_v38 = vpop.f32.mrf.mxu1 }
 0xefe   :  { %v1814_v39 = vadd.f32 %v3248_v35, %v1813_v38 }
 0xf00   :  { %1990 = vrot.lane.b32.xlu1 %v1814_v39, %s3773_s1  ;;  %1823 = vrot.lane.b32.xlu0 %v1814_v39, %s3771_s25 }
 0xf04   :  { %1988 = vrot.lane.b32.xlu1 %v1814_v39, %s3772_s29 }
 0xf72   :  { %v1824_v40 = vpop.permute.xlu0 %1823  ;;  %v1991_v41 = vpop.permute.xlu1 %1990 }
 0xf73   :  { %3588 = vmatpush3.xpose.msk.msra.mxu1 %vm447_vm7, %v1824_v40 }
 0xf74   :  { %3597 = vmatprep.subr.mxu1 %v3767_v15 }
 0xf76   :  { %3590 = vmatmul.mubr.msk.f32.vlgmr.msra.gmra.mxu1 %vm447_vm7, %v1814_v39  ;;  %v1989_v42 = vpop.permute.xlu1 %1988 }
 0xf77   :  { %3598 = vmatpush3.xpose.msk.msra.mxu1 %vm447_vm7, %v1991_v41  ;;  %3599 = vmatprep.mubr.msk.f32.mxu1 %vm3769_vm6, %v3767_v15 }
 0xf78   :  { %3607 = vmatprep.subr.mxu1 %v3767_v15 }
 0xf7a   :  { %3600 = vmatmul.mubr.msk.f32.vlgmr.msra.gmra.mxu1 %vm447_vm7, %v1989_v42 }
 0xf7b   :  { %3611 = vmatprep.mubr.msk.f32.mxu1 %vm3769_vm6, %v3767_v15  ;;  %3608 = vmatpush3.msra.mxu1 %v3246_v10 }
 0xf7c   :  { %3609 = vmatprep.subr.mxu1 %v3767_v15 }
 0xf7d   :  { %3610 = vmatpush3.msra.mxu1 %v3245_v11 }
 0xf7e   :  { %3621 = vmatprep.subr.mxu1 %v3767_v15 }
0x1036   :  { %v1895_v43 = vpop.f32.mrf.mxu1 }
0x1037   :  { %v1899_v44 = vmul.f32 0.25, %v1895_v43 }
0x1038   :  { %v3591_v45 = vpop.f32.mrf.mxu1 }
0x1039   :  { %v1900_v46 = vadd.f32 %v1899_v44, %v4020_v23 }
0x103a   :  { %v2062_v47 = vpop.f32.mrf.mxu1 }
0x103b   :  { %v2066_v48 = vmul.f32 0.25, %v2062_v47  ;;  %v1901_v49 = vsel %vm134_vm1, %v1900_v46, -inf }
0x103c   :  { %1902 = vmax.xlane.f32.xlu0 %v1901_v49  ;;  %v3601_v50 = vpop.f32.mrf.mxu1 }
0x103d   :  { %v2067_v51 = vadd.f32 %v2066_v48, %v4020_v23  ;;  %v3268_v48 = vld [vmem:[%s4434_s10 + $0x1] ss:$0 sm:$0xff] }
0x103f   :  { %v2068_v52 = vsel %vm134_vm1, %v2067_v51, -inf }
0x1040   :  { %2069 = vmax.xlane.f32.xlu1 %v2068_v52 }
0x1051   :  { %1912 = vrot.lane.b32.xlu1 %v1814_v39, %s3770_s3 }
0x1055   :  { %2303 = vrot.lane.b32.xlu1 %v4224_v37, %s3771_s25 }
0x1059   :  { %2470 = vrot.lane.b32.xlu1 %v4224_v37, %s3773_s1 }
0x10c5   :  { %v1903_v53 = vpop.xlane.xlu0 %1902 }
0x10c6   :  { %v1904_v54 = vsub.f32 %v1900_v46, %v1903_v53 }
0x10c8   :  { %v1905_v55 = vmul.f32 1.442695, %v1904_v54 }
0x10c9   :  { %v2070_v56 = vpop.xlane.xlu1 %2069 }
0x10ca   :  { %3738 = vpow2.f32 %v1905_v55  ;;  %v2071_v57 = vsub.f32 %v2067_v51, %v2070_v56 }
0x10cc   :  { %v2072_v58 = vmul.f32 1.442695, %v2071_v57 }
0x10cd   :  { %v1913_v60 = vpop.permute.xlu1 %1912 }
0x10ce   :  { %3740 = vpow2.f32 %v2072_v58  ;;  %3593 = vmatpush3.msra.mxu0 %v1913_v60 }
0x10cf   :  { %3602 = vmatprep.subr.mxu0 %v3767_v15 }
0x10d1   :  { %v2304_v14 = vpop.permute.xlu1 %2303 }
0x10d5   :  { %v2471_v18 = vpop.permute.xlu1 %2470 }
0x10d7   :  { %v3739_v23 = vpop.eup %3738 }
0x10d8   :  { %v1907_v7 = vsel %vm134_vm1, %v3739_v23, 0.0 }
0x10d9   :  { %1908 = vadd.xlane.f32.xlu0 %v1907_v7 }
0x10db   :  { %v3741_v61 = vpop.eup %3740 }
0x10dc   :  { %v2074_v62 = vsel %vm134_vm1, %v3741_v61, 0.0 }
0x10dd   :  { %2075 = vadd.xlane.f32.xlu0 %v2074_v62 }
0x10f3   :  { %2079 = vrot.lane.b32.xlu0 %v1814_v39, %s3774_s0 }
0x10f7   :  { %2468 = vrot.lane.b32.xlu0 %v4224_v37, %s3772_s29 }
0x1162   :  { %v1909_v63 = vpop.xlane.xlu0 %1908 }
0x1163   :  { %3742 = vrcp.f32 %v1909_v63 }
0x1166   :  { %v2076_v0 = vpop.xlane.xlu0 %2075 }
0x1167   :  { %3744 = vrcp.f32 %v2076_v0 }
0x116a   :  { %v2080_v6 = vpop.permute.xlu0 %2079 }
0x116e   :  { %v2469_v19 = vpop.permute.xlu0 %2468 }
0x1170   :  { %v3743_v1 = vpop.eup %3742 }
0x1171   :  { %v1911_v2 = vmul.f32 %v3743_v1, %v3739_v23 }
0x1173   :  { %3595 = vmatmul.mubr.msk.f32.vlgmr.msra.gmra.mxu0 %vm134_vm1, %v1911_v2 }
0x1174   :  { %v3745_v3 = vpop.eup %3744  ;;  %3603 = vmatpush3.msra.mxu0 %v2080_v6  ;;  %3604 = vmatprep.mubr.msk.f32.mxu0 %vm3769_vm6, %v3767_v15 }
0x1175   :  { %v2078_v4 = vmul.f32 %v3745_v3, %v3741_v61  ;;  %3614 = vmatprep.subr.mxu0 %v3767_v15 }
0x1177   :  { %3605 = vmatmul.mubr.msk.f32.vlgmr.msra.gmra.mxu0 %vm134_vm1, %v2078_v4 }
0x1178   :  { %3615 = vmatpush3.msra.mxu0 %v4261_v9  ;;  %3618 = vmatprep.mubr.msk.f32.mxu0 %vm3769_vm6, %v3767_v15 }
0x1179   :  { %3616 = vmatprep.subr.mxu0 %v3767_v15 }
0x117a   :  { %3617 = vmatpush3.msra.mxu0 %v4271_v8 }
0x117b   :  { %3626 = vmatprep.subr.mxu0 %v3767_v15 }
0x1233   :  { %v1984_v13 = vpop.f32.mrf.mxu0 }
0x1234   :  { %3619 = vmatmul.mubr.msk.f32.vlgmr.msra.gmra.mxu0 %vm447_vm7, %v1984_v13 }
0x1235   :  { %v3596_v5 = vpop.f32.mrf.mxu0  ;;  %3628 = vmatprep.mubr.msk.f32.mxu0 %vm3769_vm6, %v3767_v15 }
0x1237   :  { %v2151_v16 = vpop.f32.mrf.mxu0 }
0x1238   :  { %3612 = vmatmul.mubr.msk.f32.vlgmr.msra.gmra.mxu1 %vm447_vm7, %v2151_v16 }
0x1239   :  { %3622 = vmatpush3.xpose.msk.msra.mxu1 %vm447_vm7, %v2304_v14  ;;  %v3606_v17 = vpop.f32.mrf.mxu0  ;;  %3623 = vmatprep.mubr.msk.f32.mxu1 %vm3769_vm6, %v3767_v15 }
0x123a   :  { %3631 = vmatprep.subr.mxu1 %v3767_v15 }
0x123c   :  { %3624 = vmatmul.mubr.msk.f32.vlgmr.msra.gmra.mxu1 %vm447_vm7, %v4224_v37 }
0x123d   :  { %3632 = vmatpush3.xpose.msk.msra.mxu1 %vm447_vm7, %v2471_v18  ;;  %3633 = vmatprep.mubr.msk.f32.mxu1 %vm3769_vm6, %v3767_v15 }
0x123e   :  { %3641 = vmatprep.subr.mxu1 %v3767_v15 }
0x1240   :  { %3634 = vmatmul.mubr.msk.f32.vlgmr.msra.gmra.mxu1 %vm447_vm7, %v2469_v19 }
0x1241   :  { %3642 = vmatpush3.msra.mxu1 %v3246_v10  ;;  %3645 = vmatprep.mubr.msk.f32.mxu1 %vm3769_vm6, %v3767_v15 }
0x1242   :  { %3643 = vmatprep.subr.mxu1 %v3767_v15 }
0x1243   :  { %3644 = vmatpush3.msra.mxu1 %v3245_v11 }
0x12f4   :  { %v2297_v20 = vpop.f32.mrf.mxu0 }
0x12f6   :  { %v3620_v21 = vpop.f32.mrf.mxu0 }
0x12f8   :  { %v2224_v22 = vpop.f32.mrf.mxu1 }
0x12f9   :  { %v2298_v24 = vadd.f32 %v2297_v20, %v2224_v22 }
0x12fa   :  { %v3613_v25 = vpop.f32.mrf.mxu1 }
0x12fb   :  { %2301 = vst.msk [vmem:[#allocation2] sm:$0xff] %vm300_vm5, %v2298_v24  ;;  %v3272_v24 = vld [vmem:[%s4436_s12 + $0x1] ss:$0 sm:$0xff] }
0x12fc   :  { %v2375_v26 = vpop.f32.mrf.mxu1 }
0x12fd   :  { %v2379_v27 = vmul.f32 0.25, %v2375_v26 }
0x12fe   :  { %v3625_v12 = vpop.f32.mrf.mxu1 }
0x12ff   :  { %v2380_v28 = vadd.f32 %v2379_v27, %v4065_v59  ;;  %v3276_v27 = vld [vmem:[%s4437_s13 + $0x38] sm:$0xff]  ;;  %v3275_v12 = vld [vmem:[%s4437_s13 + $0x30] sm:$0xff] }
0x1300   :  { %v2542_v29 = vpop.f32.mrf.mxu1  ;;  %3655 = vmatprep.subr.mxu1 %v3276_v27 }
0x1301   :  { %v2546_v30 = vmul.f32 0.25, %v2542_v29  ;;  %v2381_v31 = vsel %vm134_vm1, %v2380_v28, -inf  ;;  %v3273_v29 = vld [vmem:[%s4437_s13 + $0x20] sm:$0xff] }
0x1302   :  { %2382 = vmax.xlane.f32.xlu1 %v2381_v31  ;;  %v3635_v33 = vpop.f32.mrf.mxu1 }
0x1303   :  { %v2547_v35 = vadd.f32 %v2546_v30, %v4065_v59  ;;  %v2782_v59 = vld [vmem:[#allocation2] sm:$0xff] }
0x1304   :  { %v2792_v49 = vadd.f32 %v3268_v48, %v2782_v59  ;;  %v3278_v59 = vld [vmem:[%s4439_s14 + $0x1] ss:$0 sm:$0xff] }
0x1305   :  { %v2548_v36 = vsel %vm134_vm1, %v2547_v35, -inf }
0x1306   :  { %2549 = vmax.xlane.f32.xlu0 %v2548_v36  ;;  %v2794_v50 = vadd.f32 %v2792_v49, %v4211_v32 }
0x1308   :  { %v2800_v51 = vsel %vm300_vm5, %v2794_v50, 0.0 }
0x138b   :  { %v2383_v38 = vpop.xlane.xlu1 %2382 }
0x138c   :  { %v2384_v39 = vsub.f32 %v2380_v28, %v2383_v38  ;;  %v3274_v28 = vld [vmem:[%s4437_s13 + $0x28] sm:$0xff] }
0x138e   :  { %v2385_v40 = vmul.f32 1.442695, %v2384_v39 }
0x138f   :  { %v2550_v41 = vpop.xlane.xlu0 %2549 }
0x1390   :  { %3746 = vpow2.f32 %v2385_v40  ;;  %v2551_v42 = vsub.f32 %v2547_v35, %v2550_v41  ;;  %v3288_v40 = vld [vmem:[%s4438_s15 + $0x78] sm:$0xff]  ;;  %v3287_v41 = vld [vmem:[%s4438_s15 + $0x70] sm:$0xff] }
0x1392   :  { %v2552_v43 = vmul.f32 1.442695, %v2551_v42  ;;  %v3286_v42 = vld [vmem:[%s4438_s15 + $0x68] sm:$0xff] }
0x1394   :  { %3748 = vpow2.f32 %v2552_v43  ;;  %v3285_v43 = vld [vmem:[%s4438_s15 + $0x60] sm:$0xff] }
0x139d   :  { %v3747_v44 = vpop.eup %3746 }
0x139e   :  { %v2387_v45 = vsel %vm134_vm1, %v3747_v44, 0.0 }
0x139f   :  { %2388 = vadd.xlane.f32.xlu0 %v2387_v45  ;;  %v3283_v45 = vld [vmem:[%s4438_s15 + $0x50] sm:$0xff] }
0x13a1   :  { %v3749_v46 = vpop.eup %3748 }
0x13a2   :  { %v2554_v47 = vsel %vm134_vm1, %v3749_v46, 0.0 }
0x13a3   :  { %2555 = vadd.xlane.f32.xlu1 %v2554_v47  ;;  %v3281_v47 = vld [vmem:[%s4438_s15 + $0x40] sm:$0xff] }
0x13b4   :  { %2559 = vrot.lane.b32.xlu1 %v4224_v37, %s3774_s0 }
0x13b5   :  { %2392 = vrot.lane.b32.xlu0 %v4224_v37, %s3770_s3 }
0x13d8   :  { %2801 = vadd.xlane.f32.xlu1 %v2800_v51 }
0x1428   :  { %v2389_v52 = vpop.xlane.xlu0 %2388 }
0x1429   :  { %3750 = vrcp.f32 %v2389_v52 }
0x142c   :  { %v2556_v53 = vpop.xlane.xlu1 %2555  ;;  %v2393_v54 = vpop.permute.xlu0 %2392 }
0x142d   :  { %3752 = vrcp.f32 %v2556_v53  ;;  %3627 = vmatpush3.msra.mxu0 %v2393_v54 }
0x142e   :  { %3636 = vmatprep.subr.mxu0 %v3767_v15 }
0x1430   :  { %v2560_v56 = vpop.permute.xlu1 %2559 }
0x1436   :  { %v3751_v37 = vpop.eup %3750 }
0x1437   :  { %v2391_v55 = vmul.f32 %v3751_v37, %v3747_v44  ;;  %v3284_v44 = vld [vmem:[%s4438_s15 + $0x58] sm:$0xff] }
0x1439   :  { %3629 = vmatmul.mubr.msk.f32.vlgmr.msra.gmra.mxu0 %vm134_vm1, %v2391_v55 }
0x143a   :  { %v3753_v57 = vpop.eup %3752  ;;  %3637 = vmatpush3.msra.mxu0 %v2560_v56  ;;  %3638 = vmatprep.mubr.msk.f32.mxu0 %vm3769_vm6, %v3767_v15 }
0x143b   :  { %v2558_v32 = vmul.f32 %v3753_v57, %v3749_v46  ;;  %3648 = vmatprep.subr.mxu0 %v3767_v15  ;;  %v3282_v46 = vld [vmem:[%s4438_s15 + $0x48] sm:$0xff] }
0x143d   :  { %3639 = vmatmul.mubr.msk.f32.vlgmr.msra.gmra.mxu0 %vm134_vm1, %v2558_v32 }
0x143e   :  { %3649 = vmatpush3.msra.mxu0 %v4261_v9  ;;  %3652 = vmatprep.mubr.msk.f32.mxu0 %vm3769_vm6, %v3767_v15 }
0x143f   :  { %3650 = vmatprep.subr.mxu0 %v3767_v15 }
0x1440   :  { %3651 = vmatpush3.msra.mxu0 %v4271_v8 }
0x1441   :  { %3666 = vmatprep.subr.mxu0 %v3288_v40 }
0x1461   :  { %v2802_v2 = vpop.xlane.xlu1 %2801 }
0x1462   :  { %v2806_v6 = vmul.f32 0.03125, %v2802_v2 }
0x1464   :  { %v2808_v3 = vsub.f32 %v2794_v50, %v2806_v6  ;;  %v3290_v6 = vld [vmem:[%s4440_s16 + $0x1] ss:$0 sm:$0xff] }
0x1466   :  { %v2810_v10 = vmul.f32 %v2808_v3, %v2808_v3 }
0x1468   :  { %v2812_v11 = vsel %vm300_vm5, %v2810_v10, 0.0 }
0x14f9   :  { %v2464_v58 = vpop.f32.mrf.mxu0 }
0x14fa   :  { %3653 = vmatmul.mubr.msk.f32.vlgmr.msra.gmra.mxu0 %vm447_vm7, %v2464_v58 }
0x14fb   :  { %v3630_v60 = vpop.f32.mrf.mxu0  ;;  %3667 = vmatpush3.msra.mxu0 %v3288_v40 }
0x14fc   :  { %3668 = vmatprep.subr.mxu0 %v3287_v41 }
0x14fd   :  { %v2631_v23 = vpop.f32.mrf.mxu0  ;;  %3669 = vmatpush3.msra.mxu0 %v3287_v41 }
0x14fe   :  { %3646 = vmatmul.mubr.msk.f32.vlgmr.msra.gmra.mxu1 %vm447_vm7, %v2631_v23  ;;  %3670 = vmatprep.subr.mxu0 %v3286_v42 }
0x14ff   :  { %v3640_v7 = vpop.f32.mrf.mxu0  ;;  %3656 = vmatpush3.msra.mxu1 %v3276_v27  ;;  %3671 = vmatpush3.msra.mxu0 %v3286_v42  ;;  %v3100_v27 = vld [vmem:[%s4443_s19] sm:$0xff] }
0x1500   :  { %3657 = vmatprep.subr.mxu1 %v3275_v12  ;;  %3672 = vmatprep.subr.mxu0 %v3285_v43  ;;  %v3296_v42 = vld [vmem:[%s4442_s18 + $0x1] ss:$0 sm:$0xff] }
0x1501   :  { %3658 = vmatpush3.msra.mxu1 %v3275_v12  ;;  %3673 = vmatpush3.msra.mxu0 %v3285_v43 }
0x1502   :  { %3659 = vmatprep.subr.mxu1 %v3274_v28  ;;  %3674 = vmatprep.subr.mxu0 %v3284_v44 }
0x1503   :  { %3660 = vmatpush3.msra.mxu1 %v3274_v28  ;;  %3675 = vmatpush3.msra.mxu0 %v3284_v44 }
0x1504   :  { %3661 = vmatprep.subr.mxu1 %v3273_v29  ;;  %3676 = vmatprep.subr.mxu0 %v3283_v45 }
0x1505   :  { %3662 = vmatpush3.msra.mxu1 %v3273_v29  ;;  %3677 = vmatpush3.msra.mxu0 %v3283_v45 }
0x1506   :  { %3678 = vmatprep.subr.mxu0 %v3282_v46 }
0x1507   :  { %3679 = vmatpush3.msra.mxu0 %v3282_v46  ;;  %v3297_v46 = vld [vmem:[%s4444_s20] ss:$0 sm:$0xff] }
0x1508   :  { %3680 = vmatprep.subr.mxu0 %v3281_v47 }
0x1509   :  { %3681 = vmatpush3.msra.mxu0 %v3281_v47 }
0x15ba   :  { %v2777_v61 = vpop.f32.mrf.mxu0 }
0x15bc   :  { %v3654_v62 = vpop.f32.mrf.mxu0 }
0x15be   :  { %v2704_v63 = vpop.f32.mrf.mxu1 }
0x15bf   :  { %v2778_v0 = vadd.f32 %v2777_v61, %v2704_v63 }
0x15c0   :  { %v3647_v1 = vpop.f32.mrf.mxu1 }
0x15c1   :  { %2781 = vst.msk [vmem:[#allocation2 + $0x8] sm:$0xff] %vm300_vm5, %v2778_v0 }
0x15c8   :  { %v2783_v15 = vld [vmem:[#allocation2 + $0x8] sm:$0xff] }
0x15c9   :  { %v2793_v4 = vadd.f32 %v3268_v48, %v2783_v15 }
0x15cb   :  { %v2795_v9 = vadd.f32 %v2793_v4, %v4215_v34  ;;  %v3271_v34 = vld [vmem:[%s4435_s11 + $0x1] ss:$0 sm:$0xff] }
0x15cd   :  { %v2803_v8 = vsel %vm300_vm5, %v2795_v9, 0.0 }
0x15ce   :  { %2804 = vadd.xlane.f32.xlu0 %v2803_v8 }
0x15d2   :  { %2813 = vadd.xlane.f32.xlu0 %v2812_v11 }
0x1657   :  { %v2805_v13 = vpop.xlane.xlu0 %2804 }
0x1658   :  { %v2807_v5 = vmul.f32 0.03125, %v2805_v13 }
0x165a   :  { %v2809_v14 = vsub.f32 %v2795_v9, %v2807_v5 }
0x165b   :  { %v2814_v16 = vpop.xlane.xlu0 %2813 }
0x165c   :  { %v2818_v17 = vmul.f32 0.03125, %v2814_v16  ;;  %v2811_v18 = vmul.f32 %v2809_v14, %v2809_v14 }
0x165e   :  { %v2820_v19 = vadd.f32 1e-12, %v2818_v17  ;;  %v2815_v20 = vsel %vm300_vm5, %v2811_v18, 0.0 }
0x165f   :  { %2816 = vadd.xlane.f32.xlu1 %v2815_v20 }
0x1660   :  { %3754 = vrsqrt.f32 %v2820_v19 }
0x166d   :  { %v3755_v21 = vpop.eup %3754 }
0x166e   :  { %v2824_v22 = vmul.f32 %v3755_v21, %v2808_v3 }
0x1670   :  { %v2832_v25 = vmul.f32 %v3271_v34, %v2824_v22 }
0x1672   :  { %v4341_v26 = vadd.f32 %v3272_v24, %v2832_v25  ;;  %v3102_v25 = vld [vmem:[%s4443_s19 + $0x10] sm:$0xff] }
0x1674   :  { %3663 = vmatprep.mubr.msk.f32.mxu1 %vm300_vm5, %v4341_v26 }
0x16e8   :  { %v2817_v30 = vpop.xlane.xlu1 %2816 }
0x16e9   :  { %v2819_v31 = vmul.f32 0.03125, %v2817_v30 }
0x16eb   :  { %v2821_v33 = vadd.f32 1e-12, %v2819_v31 }
0x16ed   :  { %3756 = vrsqrt.f32 %v2821_v33 }
0x16fa   :  { %v3757_v35 = vpop.eup %3756 }
0x16fb   :  { %v2825_v36 = vmul.f32 %v3757_v35, %v2809_v14 }
0x16fd   :  { %v2833_v38 = vmul.f32 %v3271_v34, %v2825_v36  ;;  %v3295_v36 = vld [vmem:[%s4441_s17 + $0x1] ss:$0 sm:$0xff] }
0x16ff   :  { %v2841_v39 = vadd.f32 %v3272_v24, %v2833_v38  ;;  %v3103_v24 = vld [vmem:[%s4443_s19 + $0x18] sm:$0xff] }
0x1700   :  { %3685 = vmatprep.subr.mxu1 %v3103_v24 }
0x1701   :  { %3664 = vmatmul.mubr.msk.f32.vlgmr.msra.gmra.mxu1 %vm300_vm5, %v2841_v39 }
0x1702   :  { %3686 = vmatpush3.msra.mxu1 %v3103_v24 }
0x1703   :  { %3687 = vmatprep.subr.mxu1 %v3102_v25 }
0x1704   :  { %3688 = vmatpush3.msra.mxu1 %v3102_v25 }
0x17c1   :  { %v3665_v48 = vpop.f32.mrf.mxu1 }
0x17c2   :  { %v2933_v49 = vadd.f32 %v3665_v48, %v3278_v59 }
0x17c3   :  { %v2927_v50 = vpop.f32.mrf.mxu1 }
0x17c4   :  { %v2937_v51 = vmul.f32 %v2933_v49, %v2933_v49  ;;  %v2928_v52 = vadd.f32 %v3278_v59, %v2927_v50 }
0x17c6   :  { %v2939_v53 = vmul.f32 %v2937_v51, %v2933_v49  ;;  %v2936_v54 = vmul.f32 %v2928_v52, %v2928_v52 }
0x17c8   :  { %v2941_v37 = vmul.f32 0.044715, %v2939_v53  ;;  %v2938_v55 = vmul.f32 %v2936_v54, %v2928_v52 }
0x17ca   :  { %v2943_v56 = vadd.f32 %v2941_v37, %v2933_v49  ;;  %v2940_v57 = vmul.f32 0.044715, %v2938_v55 }
0x17cc   :  { %v2945_v32 = vmul.f32 0.7978846, %v2943_v56  ;;  %v2942_v58 = vadd.f32 %v2940_v57, %v2928_v52 }
0x17ce   :  { %3758 = vtanh.f32 %v2945_v32  ;;  %v2944_v60 = vmul.f32 0.7978846, %v2942_v58 }
0x17d0   :  { %3760 = vtanh.f32 %v2944_v60 }
0x17db   :  { %v3759_v23 = vpop.eup %3758 }
0x17dc   :  { %v2949_v7 = vadd.f32 1.0, %v3759_v23 }
0x17dd   :  { %v3761_v61 = vpop.eup %3760 }
0x17de   :  { %v2948_v62 = vadd.f32 1.0, %v3761_v61  ;;  %v2951_v63 = vmul.f32 0.5, %v2949_v7 }
0x17e0   :  { %v2950_v0 = vmul.f32 0.5, %v2948_v62  ;;  %v2953_v2 = vmul.f32 %v2951_v63, %v2933_v49 }
0x17e2   :  { %v2952_v1 = vmul.f32 %v2950_v0, %v2928_v52 }
0x17e4   :  { %3682 = vmatprep.mubr.msk.f32.mxu0 %vm1595_vm8, %v2952_v1 }
0x17e5   :  { %3683 = vmatmul.mubr.msk.f32.vlgmr.msra.gmra.mxu0 %vm1595_vm8, %v2953_v2 }
0x18a5   :  { %v3684_v15 = vpop.f32.mrf.mxu0 }
0x18a6   :  { %v3049_v3 = vadd.f32 %v3684_v15, %v3290_v6 }
0x18a7   :  { %v3043_v4 = vpop.f32.mrf.mxu0 }
0x18a8   :  { %v3044_v9 = vadd.f32 %v3290_v6, %v3043_v4  ;;  %v3053_v8 = vadd.f32 %v3049_v3, %v2841_v39 }
0x18aa   :  { %v3061_v10 = vsel %vm300_vm5, %v3053_v8, 0.0  ;;  %v3052_v11 = vadd.f32 %v3044_v9, %v4341_v26  ;;  %v3101_v26 = vld [vmem:[%s4443_s19 + $0x8] sm:$0xff] }
0x18ab   :  { %3062 = vadd.xlane.f32.xlu1 %v3061_v10  ;;  %3689 = vmatprep.subr.mxu1 %v3101_v26 }
0x18ac   :  { %v3058_v13 = vsel %vm300_vm5, %v3052_v11, 0.0  ;;  %3690 = vmatpush3.msra.mxu1 %v3101_v26 }
0x18ad   :  { %3059 = vadd.xlane.f32.xlu0 %v3058_v13  ;;  %3691 = vmatprep.subr.mxu1 %v3100_v27 }
0x18ae   :  { %3692 = vmatpush3.msra.mxu1 %v3100_v27 }
0x1934   :  { %v3063_v5 = vpop.xlane.xlu1 %3062 }
0x1935   :  { %v3065_v14 = vmul.f32 0.03125, %v3063_v5 }
0x1936   :  { %v3060_v16 = vpop.xlane.xlu0 %3059 }
0x1937   :  { %v3067_v17 = vsub.f32 %v3053_v8, %v3065_v14  ;;  %v3064_v18 = vmul.f32 0.03125, %v3060_v16 }
0x1939   :  { %v3066_v19 = vsub.f32 %v3052_v11, %v3064_v18  ;;  %v3069_v20 = vmul.f32 %v3067_v17, %v3067_v17 }
0x193b   :  { %v3073_v21 = vsel %vm300_vm5, %v3069_v20, 0.0  ;;  %v3068_v34 = vmul.f32 %v3066_v19, %v3066_v19 }
0x193c   :  { %3074 = vadd.xlane.f32.xlu1 %v3073_v21 }
0x193d   :  { %v3070_v22 = vsel %vm300_vm5, %v3068_v34, 0.0 }
0x193e   :  { %3071 = vadd.xlane.f32.xlu0 %v3070_v22 }
0x19c5   :  { %v3075_v12 = vpop.xlane.xlu1 %3074 }
0x19c6   :  { %v3077_v28 = vmul.f32 0.03125, %v3075_v12 }
0x19c7   :  { %v3072_v29 = vpop.xlane.xlu0 %3071 }
0x19c8   :  { %v3079_v30 = vadd.f32 1e-12, %v3077_v28  ;;  %v3076_v31 = vmul.f32 0.03125, %v3072_v29 }
0x19ca   :  { %3762 = vrsqrt.f32 %v3079_v30  ;;  %v3078_v33 = vadd.f32 1e-12, %v3076_v31 }
0x19cc   :  { %3764 = vrsqrt.f32 %v3078_v33 }
0x19d7   :  { %v3763_v35 = vpop.eup %3762 }
0x19d8   :  { %v3083_v38 = vmul.f32 %v3763_v35, %v3067_v17 }
0x19d9   :  { %v3765_v39 = vpop.eup %3764 }
0x19da   :  { %v3082_v40 = vmul.f32 %v3765_v39, %v3066_v19  ;;  %v3091_v41 = vmul.f32 %v3295_v36, %v3083_v38 }
0x19dc   :  { %v3090_v43 = vmul.f32 %v3295_v36, %v3082_v40  ;;  %v3099_v45 = vadd.f32 %v3296_v42, %v3091_v41 }
0x19de   :  { %v3098_v44 = vadd.f32 %v3296_v42, %v3090_v43 }
0x19e0   :  { %3693 = vmatprep.mubr.msk.f32.mxu1 %vm300_vm5, %v3098_v44 }
0x19e1   :  { %3694 = vmatmul.mubr.msk.f32.vlgmr.msra.gmra.mxu1 %vm300_vm5, %v3099_v45 }
0x1aa1   :  { %v3695_v47 = vpop.f32.mrf.mxu1 }
0x1aa2   :  { %v3189_v59 = vadd.f32 %v3695_v47, %v3297_v46 }
0x1aa3   :  { %v3183_v48 = vpop.f32.mrf.mxu1 }
0x1aa4   :  { %3193 = vst [vmem:[%s4445_s21 + $0x8] sm:$0xff] %v3189_v59  ;;  %v3184_v49 = vadd.f32 %v3297_v46, %v3183_v48 }
0x1aa6   :  { %3192 = vst [vmem:[%s4445_s21] sm:$0xff] %v3184_v49 }

</bundles_post_ra>
